<compile_context>
chip_gen: v5e
topology: v5e:2x2
jax: 0.10.0
libtpu: 0.0.40
codegen_flags: <defaults>
</compile_context>

<pallas_src>
import jax
import jax.numpy as jnp
import numpy as np
from jax.experimental import pallas as pl
from jax.experimental.pallas import tpu as pltpu


# ------------------------------ Pallas kernel ------------------------------

def cvae_kernel(x_ref, y_ref, eps_ref, mask_ref,
                w1x_ref, w1y_ref, b1_ref, w2_ref, b2_ref, wmlv_ref, bmlv_ref,
                wzz_ref, wzx_ref, bz_ref, wih_ref, whh_ref, bg_ref,
                wc_ref, bc_ref,
                out_ref, mu_ref, lv_ref, ha_ref):
    f32 = jnp.float32
    x = x_ref[...]
    y = y_ref[...]
    B = x.shape[0]
    T, _, D = ha_ref.shape
    Z = mu_ref.shape[1]

    # ----- encoder: fc1(ReLU) -> fc2(ReLU) -> fused [mu | log_var] head -----
    h1 = jnp.maximum(
        jnp.dot(x, w1x_ref[...], preferred_element_type=f32)
        + jnp.dot(y, w1y_ref[...], preferred_element_type=f32)
        + b1_ref[...], 0.0)
    h2 = jnp.maximum(
        jnp.dot(h1, w2_ref[...], preferred_element_type=f32) + b2_ref[...], 0.0)
    mlv = jnp.dot(h2, wmlv_ref[...], preferred_element_type=f32) + bmlv_ref[...]
    mu = mlv[:, :Z]
    lv = mlv[:, Z:]
    mu_ref[...] = mu
    lv_ref[...] = lv

    # ----- reparameterization (in-kernel; eps supplied by the wrapper) -----
    z = eps_ref[...] * jnp.exp(0.5 * lv) + mu

    # ----- decoder: z_fc(ReLU), input held constant over the sequence -----
    h0 = jnp.maximum(
        jnp.dot(z, wzz_ref[...], preferred_element_type=f32)
        + jnp.dot(x, wzx_ref[...], preferred_element_type=f32)
        + bz_ref[...], 0.0)

    # Per-gate input projections (constant across time) and recurrent weights,
    # all loaded/hoisted once before the loop.  Gate order: i, f, g, o.
    xp_i = jnp.dot(h0, wih_ref[0], preferred_element_type=f32) + bg_ref[0]
    xp_f = jnp.dot(h0, wih_ref[1], preferred_element_type=f32) + bg_ref[1]
    xp_g = jnp.dot(h0, wih_ref[2], preferred_element_type=f32) + bg_ref[2]
    xp_o = jnp.dot(h0, wih_ref[3], preferred_element_type=f32) + bg_ref[3]
    whh_i = whh_ref[0]
    whh_f = whh_ref[1]
    whh_g = whh_ref[2]
    whh_o = whh_ref[3]

    def step(t, carry):
        h, c = carry
        gi = jax.nn.sigmoid(xp_i + jnp.dot(h, whh_i, preferred_element_type=f32))
        gf = jax.nn.sigmoid(xp_f + jnp.dot(h, whh_f, preferred_element_type=f32))
        gg = jnp.tanh(xp_g + jnp.dot(h, whh_g, preferred_element_type=f32))
        go = jax.nn.sigmoid(xp_o + jnp.dot(h, whh_o, preferred_element_type=f32))
        c = gf * c + gi * gg
        h = go * jnp.tanh(c)
        # tanh + dropout (mask already scaled by 1/(1-p)); time-major -> free view.
        ha_ref[t] = jnp.tanh(h) * mask_ref[t]
        return (h, c)

    h_init = jnp.zeros((B, D), f32)
    c_init = jnp.zeros((B, D), f32)
    jax.lax.fori_loop(0, T, step, (h_init, c_init), unroll=True)

    # ----- Conv1d(1,2,k=D,stride=D) == Linear(D,2): one batched matmul and
    # ----- a single store, instead of T masked lane-width-2 stores.
    ha = ha_ref[...]                                       # (T, B, D)
    wcb = jnp.broadcast_to(wc_ref[...], (T, D, 2))         # (T, D, 2)
    out_ref[...] = (jnp.einsum("tbd,tdk->tbk", ha, wcb,
                               preferred_element_type=f32) + bc_ref[...])


# -------------------------------- wrappers ---------------------------------

_VMEM = pl.BlockSpec(memory_space=pltpu.MemorySpace.VMEM)


def prepare_params(raw, cfg):
    """One-time weight re-layout (done outside the hot path)."""
    E, Z, D = cfg["encoder_dim"], cfg["z_dim"], cfg["z_decoder_dim"]
    return dict(
        # encoder
        w1x=raw["w1"][:E], w1y=raw["w1"][E:], b1=raw["b1"],
        w2=raw["w2"], b2=raw["b2"],
        wmlv=jnp.concatenate([raw["wmu"], raw["wlv"]], axis=1),   # (H/2, 2Z)
        bmlv=jnp.concatenate([raw["bmu"], raw["blv"]], axis=1),   # (1, 2Z)
        # decoder
        wz_z=raw["wz"][:Z], wz_x=raw["wz"][Z:], bz=raw["bz"],
        wih4=jnp.stack([raw["wih"][:, k * D:(k + 1) * D] for k in range(4)]),  # (4,H/2,D)
        whh4=jnp.stack([raw["whh"][:, k * D:(k + 1) * D] for k in range(4)]),  # (4,D,D)
        bg4=raw["bg"].reshape(4, D)[:, None, :],                               # (4,1,D)
        wconv=raw["wconv"], bconv=raw["bconv"],
    )


def cvae_forward(x, y, params, cfg, key):
    """Train-mode forward: returns (decoder_out (B,T,2), mu, log_var)."""
    B = x.shape[0]
    Z, T, D = cfg["z_dim"], cfg["pred_seq"], cfg["z_decoder_dim"]
    k_eps, k_drop = jax.random.split(key)

    eps = jax.random.normal(k_eps, (B, Z), dtype=jnp.float32)
    p = cfg["z_drop"]
    keep = jax.random.bernoulli(k_drop, 1.0 - p, (T, B, D))      # time-major
    drop_mask = keep.astype(jnp.float32) / (1.0 - p)

    out_tb, mu, log_var = pl.pallas_call(
        cvae_kernel,
        out_shape=(jax.ShapeDtypeStruct((T, B, 2), jnp.float32),
                   jax.ShapeDtypeStruct((B, Z), jnp.float32),
                   jax.ShapeDtypeStruct((B, Z), jnp.float32)),
        in_specs=[_VMEM] * 19,
        out_specs=(_VMEM, _VMEM, _VMEM),
        scratch_shapes=[pltpu.VMEM((T, B, D), jnp.float32)],
    )(x, y, eps, drop_mask,
      params["w1x"], params["w1y"], params["b1"], params["w2"], params["b2"],
      params["wmlv"], params["bmlv"],
      params["wz_z"], params["wz_x"], params["bz"],
      params["wih4"], params["whh4"], params["bg4"],
      params["wconv"], params["bconv"])

    # tiny (T,B,2) -> (B,T,2) layout fix; negligible vs. the fused kernel.
    out = jnp.transpose(out_tb, (1, 0, 2))
    return out, mu, log_var
    # NOTE: at realistic batch sizes, add a grid over the batch axis
    # (tiles >=128 rows, dimension_semantics=("parallel",)) — not needed at B=2.


# --------------------------- pure-JAX reference -----------------------------

def reference_forward(x, y, z, drop_mask, raw, cfg):
    hp = jax.lax.Precision.HIGHEST
    xy = jnp.concatenate([x, y], axis=1)
    h1 = jax.nn.relu(jnp.dot(xy, raw["w1"], precision=hp) + raw["b1"])
    h2 = jax.nn.relu(jnp.dot(h1, raw["w2"], precision=hp) + raw["b2"])
    mu = jnp.dot(h2, raw["wmu"], precision=hp) + raw["bmu"]
    lv = jnp.dot(h2, raw["wlv"], precision=hp) + raw["blv"]

    zx = jnp.concatenate([z, x], axis=1)
    h0 = jax.nn.relu(jnp.dot(zx, raw["wz"], precision=hp) + raw["bz"])
    D = cfg["z_decoder_dim"]
    x_proj = jnp.dot(h0, raw["wih"], precision=hp) + raw["bg"]
    B = x.shape[0]
    h = jnp.zeros((B, D), jnp.float32)
    c = jnp.zeros((B, D), jnp.float32)
    outs = []
    for t in range(cfg["pred_seq"]):
        gates = x_proj + jnp.dot(h, raw["whh"], precision=hp)
        i = jax.nn.sigmoid(gates[:, 0:D])
        f = jax.nn.sigmoid(gates[:, D:2 * D])
        g = jnp.tanh(gates[:, 2 * D:3 * D])
        o = jax.nn.sigmoid(gates[:, 3 * D:4 * D])
        c = f * c + i * g
        h = o * jnp.tanh(c)
        ht = jnp.tanh(h) * drop_mask[:, t, :]
        outs.append(jnp.dot(ht, raw["wconv"], precision=hp) + raw["bconv"])
    return jnp.stack(outs, axis=1), mu, lv


# ----------------------------------- main -----------------------------------

if __name__ == "__main__":
    cfg = dict(z_dim=8, pred_seq=8, encoder_dim=16, n_hidden=32,
               z_decoder_dim=16, z_drop=0.1)
    B = 2
    E, H, Z = cfg["encoder_dim"], cfg["n_hidden"], cfg["z_dim"]
    D, T = cfg["z_decoder_dim"], cfg["pred_seq"]

    root = jax.random.PRNGKey(0)
    keys = jax.random.split(root, 16)

    def init(k, shape, scale=0.1):
        return (scale * jax.random.normal(k, shape)).astype(jnp.float32)

    raw = {
        # encoder
        "w1":  init(keys[0], (2 * E, H)),       "b1":  init(keys[1], (1, H)),
        "w2":  init(keys[2], (H, H // 2)),      "b2":  init(keys[3], (1, H // 2)),
        "wmu": init(keys[4], (H // 2, Z)),      "bmu": init(keys[5], (1, Z)),
        "wlv": init(keys[6], (H // 2, Z)),      "blv": init(keys[7], (1, Z)),
        # decoder
        "wz":  init(keys[8], (Z + E, H // 2)),  "bz":  init(keys[9], (1, H // 2)),
        "wih": init(keys[10], (H // 2, 4 * D)),  # LSTM weight_ih_l0^T, gates i,f,g,o
        "whh": init(keys[11], (D, 4 * D)),       # LSTM weight_hh_l0^T
        "bg":  init(keys[12], (1, 4 * D)),       # bias_ih + bias_hh (combined)
        # Conv1d(1, 2, kernel=D, stride=D) on a length-D signal == Linear(D, 2)
        "wconv": init(keys[13], (D, 2)),
        "bconv": init(keys[14], (1, 2)),
    }
    params = prepare_params(raw, cfg)

    data_key, fwd_key = jax.random.split(keys[15])
    kx, ky = jax.random.split(data_key)
    x = jax.random.normal(kx, (B, E), dtype=jnp.float32)
    y = jax.random.normal(ky, (B, E), dtype=jnp.float32)

    out, mu, log_var = cvae_forward(x, y, params, cfg, fwd_key)
    jax.block_until_ready((out, mu, log_var))

    # correctness check vs pure-JAX reference using the same eps / dropout mask
    k_eps, k_drop = jax.random.split(fwd_key)
    eps = jax.random.normal(k_eps, (B, Z), dtype=jnp.float32)
    z = eps * jnp.exp(0.5 * log_var) + mu
    keep = jax.random.bernoulli(k_drop, 1.0 - cfg["z_drop"], (T, B, D))
    drop_mask_btd = jnp.transpose(keep.astype(jnp.float32) / (1.0 - cfg["z_drop"]),
                                  (1, 0, 2))
    ref_out, ref_mu, ref_lv = reference_forward(x, y, z, drop_mask_btd, raw, cfg)

    # Reference uses Precision.HIGHEST; kernel uses default MXU f32 precision,
    # so keep a modest tolerance.
    np.testing.assert_allclose(np.asarray(mu), np.asarray(ref_mu), rtol=1e-2, atol=1e-2)
    np.testing.assert_allclose(np.asarray(log_var), np.asarray(ref_lv), rtol=1e-2, atol=1e-2)
    np.testing.assert_allclose(np.asarray(out), np.asarray(ref_out), rtol=1e-2, atol=1e-2)

    print("KERNEL_OK")
</pallas_src>

<mosaic_0001>
module attributes {stable_mosaic.version = 11 : i64} {
  func.func @cvae_kernel(%arg0: memref<2x16xf32, #tpu.memory_space<vmem>>, %arg1: memref<2x16xf32, #tpu.memory_space<vmem>>, %arg2: memref<2x8xf32, #tpu.memory_space<vmem>>, %arg3: memref<8x2x16xf32, #tpu.memory_space<vmem>>, %arg4: memref<16x32xf32, #tpu.memory_space<vmem>>, %arg5: memref<16x32xf32, #tpu.memory_space<vmem>>, %arg6: memref<1x32xf32, #tpu.memory_space<vmem>>, %arg7: memref<32x16xf32, #tpu.memory_space<vmem>>, %arg8: memref<1x16xf32, #tpu.memory_space<vmem>>, %arg9: memref<16x16xf32, #tpu.memory_space<vmem>>, %arg10: memref<1x16xf32, #tpu.memory_space<vmem>>, %arg11: memref<8x16xf32, #tpu.memory_space<vmem>>, %arg12: memref<16x16xf32, #tpu.memory_space<vmem>>, %arg13: memref<1x16xf32, #tpu.memory_space<vmem>>, %arg14: memref<4x16x16xf32, #tpu.memory_space<vmem>>, %arg15: memref<4x16x16xf32, #tpu.memory_space<vmem>>, %arg16: memref<4x1x16xf32, #tpu.memory_space<vmem>>, %arg17: memref<16x2xf32, #tpu.memory_space<vmem>>, %arg18: memref<1x2xf32, #tpu.memory_space<vmem>>, %arg19: memref<8x2x2xf32, #tpu.memory_space<vmem>>, %arg20: memref<2x8xf32, #tpu.memory_space<vmem>>, %arg21: memref<2x8xf32, #tpu.memory_space<vmem>>, %arg22: memref<8x2x16xf32, #tpu.memory_space<vmem>>) attributes {dimension_semantics = [], scalar_prefetch = 0 : i64, scratch_operands = 1 : i64, tpu.core_type = #tpu.core_type<tc>} {
    %c0 = arith.constant 0 : index
    %c0_0 = arith.constant 0 : index
    %0 = vector.load %arg0[%c0, %c0_0] : memref<2x16xf32, #tpu.memory_space<vmem>>, vector<2x16xf32>
    %c0_1 = arith.constant 0 : index
    %c0_2 = arith.constant 0 : index
    %1 = vector.load %arg1[%c0_1, %c0_2] : memref<2x16xf32, #tpu.memory_space<vmem>>, vector<2x16xf32>
    %c0_3 = arith.constant 0 : index
    %c0_4 = arith.constant 0 : index
    %2 = vector.load %arg4[%c0_3, %c0_4] : memref<16x32xf32, #tpu.memory_space<vmem>>, vector<16x32xf32>
    %cst = arith.constant dense<0.000000e+00> : vector<2x32xf32>
    %3 = tpu.matmul %0, %2, %cst {dimension_numbers = #tpu.dot_dimension_numbers<[1], [0], [0], [1], [0, 0, 1, 1], [], []>} : vector<2x16xf32>, vector<16x32xf32>, vector<2x32xf32> -> vector<2x32xf32>
    %c0_5 = arith.constant 0 : index
    %c0_6 = arith.constant 0 : index
    %4 = vector.load %arg5[%c0_5, %c0_6] : memref<16x32xf32, #tpu.memory_space<vmem>>, vector<16x32xf32>
    %cst_7 = arith.constant dense<0.000000e+00> : vector<2x32xf32>
    %5 = tpu.matmul %1, %4, %cst_7 {dimension_numbers = #tpu.dot_dimension_numbers<[1], [0], [0], [1], [0, 0, 1, 1], [], []>} : vector<2x16xf32>, vector<16x32xf32>, vector<2x32xf32> -> vector<2x32xf32>
    %6 = arith.addf %3, %5 : vector<2x32xf32>
    %c0_8 = arith.constant 0 : index
    %c0_9 = arith.constant 0 : index
    %7 = vector.load %arg6[%c0_8, %c0_9] : memref<1x32xf32, #tpu.memory_space<vmem>>, vector<1x32xf32>
    %8 = vector.broadcast %7 : vector<1x32xf32> to vector<2x32xf32>
    %9 = arith.addf %6, %8 : vector<2x32xf32>
    %cst_10 = arith.constant 0.000000e+00 : f32
    %10 = vector.broadcast %cst_10 : f32 to vector<2x32xf32>
    %11 = arith.maximumf %9, %10 : vector<2x32xf32>
    %c0_11 = arith.constant 0 : index
    %c0_12 = arith.constant 0 : index
    %12 = vector.load %arg7[%c0_11, %c0_12] : memref<32x16xf32, #tpu.memory_space<vmem>>, vector<32x16xf32>
    %cst_13 = arith.constant dense<0.000000e+00> : vector<2x16xf32>
    %13 = tpu.matmul %11, %12, %cst_13 {dimension_numbers = #tpu.dot_dimension_numbers<[1], [0], [0], [1], [0, 0, 1, 1], [], []>} : vector<2x32xf32>, vector<32x16xf32>, vector<2x16xf32> -> vector<2x16xf32>
    %c0_14 = arith.constant 0 : index
    %c0_15 = arith.constant 0 : index
    %14 = vector.load %arg8[%c0_14, %c0_15] : memref<1x16xf32, #tpu.memory_space<vmem>>, vector<1x16xf32>
    %15 = vector.broadcast %14 : vector<1x16xf32> to vector<2x16xf32>
    %16 = arith.addf %13, %15 : vector<2x16xf32>
    %cst_16 = arith.constant 0.000000e+00 : f32
    %17 = vector.broadcast %cst_16 : f32 to vector<2x16xf32>
    %18 = arith.maximumf %16, %17 : vector<2x16xf32>
    %c0_17 = arith.constant 0 : index
    %c0_18 = arith.constant 0 : index
    %19 = vector.load %arg9[%c0_17, %c0_18] : memref<16x16xf32, #tpu.memory_space<vmem>>, vector<16x16xf32>
    %cst_19 = arith.constant dense<0.000000e+00> : vector<2x16xf32>
    %20 = tpu.matmul %18, %19, %cst_19 {dimension_numbers = #tpu.dot_dimension_numbers<[1], [0], [0], [1], [0, 0, 1, 1], [], []>} : vector<2x16xf32>, vector<16x16xf32>, vector<2x16xf32> -> vector<2x16xf32>
    %c0_20 = arith.constant 0 : index
    %c0_21 = arith.constant 0 : index
    %21 = vector.load %arg10[%c0_20, %c0_21] : memref<1x16xf32, #tpu.memory_space<vmem>>, vector<1x16xf32>
    %22 = vector.broadcast %21 : vector<1x16xf32> to vector<2x16xf32>
    %23 = arith.addf %20, %22 : vector<2x16xf32>
    %24 = vector.extract_strided_slice %23 {offsets = [0, 0], sizes = [2, 8], strides = [1, 1]} : vector<2x16xf32> to vector<2x8xf32>
    %25 = vector.extract_strided_slice %23 {offsets = [0, 8], sizes = [2, 8], strides = [1, 1]} : vector<2x16xf32> to vector<2x8xf32>
    %c0_22 = arith.constant 0 : index
    %c0_23 = arith.constant 0 : index
    %26 = vector.load %arg20[%c0_22, %c0_23] : memref<2x8xf32, #tpu.memory_space<vmem>>, vector<2x8xf32>
    tpu.vector_store %arg20[%c0_22, %c0_23], %24 {strides = array<i32>} : memref<2x8xf32, #tpu.memory_space<vmem>>, vector<2x8xf32>,
    %c0_24 = arith.constant 0 : index
    %c0_25 = arith.constant 0 : index
    %27 = vector.load %arg21[%c0_24, %c0_25] : memref<2x8xf32, #tpu.memory_space<vmem>>, vector<2x8xf32>
    tpu.vector_store %arg21[%c0_24, %c0_25], %25 {strides = array<i32>} : memref<2x8xf32, #tpu.memory_space<vmem>>, vector<2x8xf32>,
    %c0_26 = arith.constant 0 : index
    %c0_27 = arith.constant 0 : index
    %28 = vector.load %arg2[%c0_26, %c0_27] : memref<2x8xf32, #tpu.memory_space<vmem>>, vector<2x8xf32>
    %cst_28 = arith.constant 5.000000e-01 : f32
    %29 = vector.broadcast %cst_28 : f32 to vector<2x8xf32>
    %30 = arith.mulf %29, %25 : vector<2x8xf32>
    %31 = math.exp %30 : vector<2x8xf32>
    %32 = arith.mulf %28, %31 : vector<2x8xf32>
    %33 = arith.addf %32, %24 : vector<2x8xf32>
    %c0_29 = arith.constant 0 : index
    %c0_30 = arith.constant 0 : index
    %34 = vector.load %arg11[%c0_29, %c0_30] : memref<8x16xf32, #tpu.memory_space<vmem>>, vector<8x16xf32>
    %cst_31 = arith.constant dense<0.000000e+00> : vector<2x16xf32>
    %35 = tpu.matmul %33, %34, %cst_31 {dimension_numbers = #tpu.dot_dimension_numbers<[1], [0], [0], [1], [0, 0, 1, 1], [], []>} : vector<2x8xf32>, vector<8x16xf32>, vector<2x16xf32> -> vector<2x16xf32>
    %c0_32 = arith.constant 0 : index
    %c0_33 = arith.constant 0 : index
    %36 = vector.load %arg12[%c0_32, %c0_33] : memref<16x16xf32, #tpu.memory_space<vmem>>, vector<16x16xf32>
    %cst_34 = arith.constant dense<0.000000e+00> : vector<2x16xf32>
    %37 = tpu.matmul %0, %36, %cst_34 {dimension_numbers = #tpu.dot_dimension_numbers<[1], [0], [0], [1], [0, 0, 1, 1], [], []>} : vector<2x16xf32>, vector<16x16xf32>, vector<2x16xf32> -> vector<2x16xf32>
    %38 = arith.addf %35, %37 : vector<2x16xf32>
    %c0_35 = arith.constant 0 : index
    %c0_36 = arith.constant 0 : index
    %39 = vector.load %arg13[%c0_35, %c0_36] : memref<1x16xf32, #tpu.memory_space<vmem>>, vector<1x16xf32>
    %40 = vector.broadcast %39 : vector<1x16xf32> to vector<2x16xf32>
    %41 = arith.addf %38, %40 : vector<2x16xf32>
    %cst_37 = arith.constant 0.000000e+00 : f32
    %42 = vector.broadcast %cst_37 : f32 to vector<2x16xf32>
    %43 = arith.maximumf %41, %42 : vector<2x16xf32>
    %c0_38 = arith.constant 0 : index
    %c0_39 = arith.constant 0 : index
    %c0_40 = arith.constant 0 : index
    %44 = vector.load %arg14[%c0_38, %c0_39, %c0_40] : memref<4x16x16xf32, #tpu.memory_space<vmem>>, vector<1x16x16xf32>
    %45 = vector.shape_cast %44 : vector<1x16x16xf32> to vector<16x16xf32>
    %cst_41 = arith.constant dense<0.000000e+00> : vector<2x16xf32>
    %46 = tpu.matmul %43, %45, %cst_41 {dimension_numbers = #tpu.dot_dimension_numbers<[1], [0], [0], [1], [0, 0, 1, 1], [], []>} : vector<2x16xf32>, vector<16x16xf32>, vector<2x16xf32> -> vector<2x16xf32>
    %c0_42 = arith.constant 0 : index
    %c0_43 = arith.constant 0 : index
    %c0_44 = arith.constant 0 : index
    %47 = vector.load %arg16[%c0_42, %c0_43, %c0_44] : memref<4x1x16xf32, #tpu.memory_space<vmem>>, vector<1x1x16xf32>
    %48 = vector.shape_cast %47 : vector<1x1x16xf32> to vector<1x16xf32>
    %49 = vector.broadcast %48 : vector<1x16xf32> to vector<2x16xf32>
    %50 = arith.addf %46, %49 : vector<2x16xf32>
    %c1 = arith.constant 1 : index
    %c0_45 = arith.constant 0 : index
    %c0_46 = arith.constant 0 : index
    %51 = vector.load %arg14[%c1, %c0_45, %c0_46] : memref<4x16x16xf32, #tpu.memory_space<vmem>>, vector<1x16x16xf32>
    %52 = vector.shape_cast %51 : vector<1x16x16xf32> to vector<16x16xf32>
    %cst_47 = arith.constant dense<0.000000e+00> : vector<2x16xf32>
    %53 = tpu.matmul %43, %52, %cst_47 {dimension_numbers = #tpu.dot_dimension_numbers<[1], [0], [0], [1], [0, 0, 1, 1], [], []>} : vector<2x16xf32>, vector<16x16xf32>, vector<2x16xf32> -> vector<2x16xf32>
    %c1_48 = arith.constant 1 : index
    %c0_49 = arith.constant 0 : index
    %c0_50 = arith.constant 0 : index
    %54 = vector.load %arg16[%c1_48, %c0_49, %c0_50] : memref<4x1x16xf32, #tpu.memory_space<vmem>>, vector<1x1x16xf32>
    %55 = vector.shape_cast %54 : vector<1x1x16xf32> to vector<1x16xf32>
    %56 = vector.broadcast %55 : vector<1x16xf32> to vector<2x16xf32>
    %57 = arith.addf %53, %56 : vector<2x16xf32>
    %c2 = arith.constant 2 : index
    %c0_51 = arith.constant 0 : index
    %c0_52 = arith.constant 0 : index
    %58 = vector.load %arg14[%c2, %c0_51, %c0_52] : memref<4x16x16xf32, #tpu.memory_space<vmem>>, vector<1x16x16xf32>
    %59 = vector.shape_cast %58 : vector<1x16x16xf32> to vector<16x16xf32>
    %cst_53 = arith.constant dense<0.000000e+00> : vector<2x16xf32>
    %60 = tpu.matmul %43, %59, %cst_53 {dimension_numbers = #tpu.dot_dimension_numbers<[1], [0], [0], [1], [0, 0, 1, 1], [], []>} : vector<2x16xf32>, vector<16x16xf32>, vector<2x16xf32> -> vector<2x16xf32>
    %c2_54 = arith.constant 2 : index
    %c0_55 = arith.constant 0 : index
    %c0_56 = arith.constant 0 : index
    %61 = vector.load %arg16[%c2_54, %c0_55, %c0_56] : memref<4x1x16xf32, #tpu.memory_space<vmem>>, vector<1x1x16xf32>
    %62 = vector.shape_cast %61 : vector<1x1x16xf32> to vector<1x16xf32>
    %63 = vector.broadcast %62 : vector<1x16xf32> to vector<2x16xf32>
    %64 = arith.addf %60, %63 : vector<2x16xf32>
    %c3 = arith.constant 3 : index
    %c0_57 = arith.constant 0 : index
    %c0_58 = arith.constant 0 : index
    %65 = vector.load %arg14[%c3, %c0_57, %c0_58] : memref<4x16x16xf32, #tpu.memory_space<vmem>>, vector<1x16x16xf32>
    %66 = vector.shape_cast %65 : vector<1x16x16xf32> to vector<16x16xf32>
    %cst_59 = arith.constant dense<0.000000e+00> : vector<2x16xf32>
    %67 = tpu.matmul %43, %66, %cst_59 {dimension_numbers = #tpu.dot_dimension_numbers<[1], [0], [0], [1], [0, 0, 1, 1], [], []>} : vector<2x16xf32>, vector<16x16xf32>, vector<2x16xf32> -> vector<2x16xf32>
    %c3_60 = arith.constant 3 : index
    %c0_61 = arith.constant 0 : index
    %c0_62 = arith.constant 0 : index
    %68 = vector.load %arg16[%c3_60, %c0_61, %c0_62] : memref<4x1x16xf32, #tpu.memory_space<vmem>>, vector<1x1x16xf32>
    %69 = vector.shape_cast %68 : vector<1x1x16xf32> to vector<1x16xf32>
    %70 = vector.broadcast %69 : vector<1x16xf32> to vector<2x16xf32>
    %71 = arith.addf %67, %70 : vector<2x16xf32>
    %c0_63 = arith.constant 0 : index
    %c0_64 = arith.constant 0 : index
    %c0_65 = arith.constant 0 : index
    %72 = vector.load %arg15[%c0_63, %c0_64, %c0_65] : memref<4x16x16xf32, #tpu.memory_space<vmem>>, vector<1x16x16xf32>
    %73 = vector.shape_cast %72 : vector<1x16x16xf32> to vector<16x16xf32>
    %c1_66 = arith.constant 1 : index
    %c0_67 = arith.constant 0 : index
    %c0_68 = arith.constant 0 : index
    %74 = vector.load %arg15[%c1_66, %c0_67, %c0_68] : memref<4x16x16xf32, #tpu.memory_space<vmem>>, vector<1x16x16xf32>
    %75 = vector.shape_cast %74 : vector<1x16x16xf32> to vector<16x16xf32>
    %c2_69 = arith.constant 2 : index
    %c0_70 = arith.constant 0 : index
    %c0_71 = arith.constant 0 : index
    %76 = vector.load %arg15[%c2_69, %c0_70, %c0_71] : memref<4x16x16xf32, #tpu.memory_space<vmem>>, vector<1x16x16xf32>
    %77 = vector.shape_cast %76 : vector<1x16x16xf32> to vector<16x16xf32>
    %c3_72 = arith.constant 3 : index
    %c0_73 = arith.constant 0 : index
    %c0_74 = arith.constant 0 : index
    %78 = vector.load %arg15[%c3_72, %c0_73, %c0_74] : memref<4x16x16xf32, #tpu.memory_space<vmem>>, vector<1x16x16xf32>
    %79 = vector.shape_cast %78 : vector<1x16x16xf32> to vector<16x16xf32>
    %cst_75 = arith.constant 0.000000e+00 : f32
    %80 = vector.broadcast %cst_75 : f32 to vector<2x16xf32>
    %cst_76 = arith.constant 0.000000e+00 : f32
    %81 = vector.broadcast %cst_76 : f32 to vector<2x16xf32>
    %c0_i32 = arith.constant 0 : i32
    %cst_77 = arith.constant dense<0.000000e+00> : vector<2x16xf32>
    %82 = tpu.matmul %80, %73, %cst_77 {dimension_numbers = #tpu.dot_dimension_numbers<[1], [0], [0], [1], [0, 0, 1, 1], [], []>} : vector<2x16xf32>, vector<16x16xf32>, vector<2x16xf32> -> vector<2x16xf32>
    %83 = arith.addf %50, %82 : vector<2x16xf32>
    %84 = arith.negf %83 : vector<2x16xf32>
    %85 = math.exp %84 : vector<2x16xf32>
    %cst_78 = arith.constant 1.000000e+00 : f32
    %86 = vector.broadcast %cst_78 : f32 to vector<2x16xf32>
    %87 = arith.addf %86, %85 : vector<2x16xf32>
    %88 = arith.divf %86, %87 : vector<2x16xf32>
    %cst_79 = arith.constant dense<0.000000e+00> : vector<2x16xf32>
    %89 = tpu.matmul %80, %75, %cst_79 {dimension_numbers = #tpu.dot_dimension_numbers<[1], [0], [0], [1], [0, 0, 1, 1], [], []>} : vector<2x16xf32>, vector<16x16xf32>, vector<2x16xf32> -> vector<2x16xf32>
    %90 = arith.addf %57, %89 : vector<2x16xf32>
    %91 = arith.negf %90 : vector<2x16xf32>
    %92 = math.exp %91 : vector<2x16xf32>
    %cst_80 = arith.constant 1.000000e+00 : f32
    %93 = vector.broadcast %cst_80 : f32 to vector<2x16xf32>
    %94 = arith.addf %93, %92 : vector<2x16xf32>
    %95 = arith.divf %93, %94 : vector<2x16xf32>
    %cst_81 = arith.constant dense<0.000000e+00> : vector<2x16xf32>
    %96 = tpu.matmul %80, %77, %cst_81 {dimension_numbers = #tpu.dot_dimension_numbers<[1], [0], [0], [1], [0, 0, 1, 1], [], []>} : vector<2x16xf32>, vector<16x16xf32>, vector<2x16xf32> -> vector<2x16xf32>
    %97 = arith.addf %64, %96 : vector<2x16xf32>
    %98 = math.tanh %97 : vector<2x16xf32>
    %cst_82 = arith.constant dense<0.000000e+00> : vector<2x16xf32>
    %99 = tpu.matmul %80, %79, %cst_82 {dimension_numbers = #tpu.dot_dimension_numbers<[1], [0], [0], [1], [0, 0, 1, 1], [], []>} : vector<2x16xf32>, vector<16x16xf32>, vector<2x16xf32> -> vector<2x16xf32>
    %100 = arith.addf %71, %99 : vector<2x16xf32>
    %101 = arith.negf %100 : vector<2x16xf32>
    %102 = math.exp %101 : vector<2x16xf32>
    %cst_83 = arith.constant 1.000000e+00 : f32
    %103 = vector.broadcast %cst_83 : f32 to vector<2x16xf32>
    %104 = arith.addf %103, %102 : vector<2x16xf32>
    %105 = arith.divf %103, %104 : vector<2x16xf32>
    %106 = arith.mulf %95, %81 : vector<2x16xf32>
    %107 = arith.mulf %88, %98 : vector<2x16xf32>
    %108 = arith.addf %106, %107 : vector<2x16xf32>
    %109 = math.tanh %108 : vector<2x16xf32>
    %110 = arith.mulf %105, %109 : vector<2x16xf32>
    %111 = math.tanh %110 : vector<2x16xf32>
    %112 = arith.index_cast %c0_i32 : i32 to index
    %c0_84 = arith.constant 0 : index
    %c0_85 = arith.constant 0 : index
    %113 = vector.load %arg3[%112, %c0_84, %c0_85] : memref<8x2x16xf32, #tpu.memory_space<vmem>>, vector<1x2x16xf32>
    %114 = vector.shape_cast %113 : vector<1x2x16xf32> to vector<2x16xf32>
    %115 = arith.mulf %111, %114 : vector<2x16xf32>
    %116 = arith.index_cast %c0_i32 : i32 to index
    %c0_86 = arith.constant 0 : index
    %c0_87 = arith.constant 0 : index
    %117 = vector.load %arg22[%116, %c0_86, %c0_87] : memref<8x2x16xf32, #tpu.memory_space<vmem>>, vector<1x2x16xf32>
    %118 = vector.shape_cast %117 : vector<1x2x16xf32> to vector<2x16xf32>
    %119 = vector.shape_cast %115 : vector<2x16xf32> to vector<1x2x16xf32>
    tpu.vector_store %arg22[%116, %c0_86, %c0_87], %119 {strides = array<i32>} : memref<8x2x16xf32, #tpu.memory_space<vmem>>, vector<1x2x16xf32>,
    %c1_i32 = arith.constant 1 : i32
    %cst_88 = arith.constant dense<0.000000e+00> : vector<2x16xf32>
    %120 = tpu.matmul %110, %73, %cst_88 {dimension_numbers = #tpu.dot_dimension_numbers<[1], [0], [0], [1], [0, 0, 1, 1], [], []>} : vector<2x16xf32>, vector<16x16xf32>, vector<2x16xf32> -> vector<2x16xf32>
    %121 = arith.addf %50, %120 : vector<2x16xf32>
    %122 = arith.negf %121 : vector<2x16xf32>
    %123 = math.exp %122 : vector<2x16xf32>
    %cst_89 = arith.constant 1.000000e+00 : f32
    %124 = vector.broadcast %cst_89 : f32 to vector<2x16xf32>
    %125 = arith.addf %124, %123 : vector<2x16xf32>
    %126 = arith.divf %124, %125 : vector<2x16xf32>
    %cst_90 = arith.constant dense<0.000000e+00> : vector<2x16xf32>
    %127 = tpu.matmul %110, %75, %cst_90 {dimension_numbers = #tpu.dot_dimension_numbers<[1], [0], [0], [1], [0, 0, 1, 1], [], []>} : vector<2x16xf32>, vector<16x16xf32>, vector<2x16xf32> -> vector<2x16xf32>
    %128 = arith.addf %57, %127 : vector<2x16xf32>
    %129 = arith.negf %128 : vector<2x16xf32>
    %130 = math.exp %129 : vector<2x16xf32>
    %cst_91 = arith.constant 1.000000e+00 : f32
    %131 = vector.broadcast %cst_91 : f32 to vector<2x16xf32>
    %132 = arith.addf %131, %130 : vector<2x16xf32>
    %133 = arith.divf %131, %132 : vector<2x16xf32>
    %cst_92 = arith.constant dense<0.000000e+00> : vector<2x16xf32>
    %134 = tpu.matmul %110, %77, %cst_92 {dimension_numbers = #tpu.dot_dimension_numbers<[1], [0], [0], [1], [0, 0, 1, 1], [], []>} : vector<2x16xf32>, vector<16x16xf32>, vector<2x16xf32> -> vector<2x16xf32>
    %135 = arith.addf %64, %134 : vector<2x16xf32>
    %136 = math.tanh %135 : vector<2x16xf32>
    %cst_93 = arith.constant dense<0.000000e+00> : vector<2x16xf32>
    %137 = tpu.matmul %110, %79, %cst_93 {dimension_numbers = #tpu.dot_dimension_numbers<[1], [0], [0], [1], [0, 0, 1, 1], [], []>} : vector<2x16xf32>, vector<16x16xf32>, vector<2x16xf32> -> vector<2x16xf32>
    %138 = arith.addf %71, %137 : vector<2x16xf32>
    %139 = arith.negf %138 : vector<2x16xf32>
    %140 = math.exp %139 : vector<2x16xf32>
    %cst_94 = arith.constant 1.000000e+00 : f32
    %141 = vector.broadcast %cst_94 : f32 to vector<2x16xf32>
    %142 = arith.addf %141, %140 : vector<2x16xf32>
    %143 = arith.divf %141, %142 : vector<2x16xf32>
    %144 = arith.mulf %133, %108 : vector<2x16xf32>
    %145 = arith.mulf %126, %136 : vector<2x16xf32>
    %146 = arith.addf %144, %145 : vector<2x16xf32>
    %147 = math.tanh %146 : vector<2x16xf32>
    %148 = arith.mulf %143, %147 : vector<2x16xf32>
    %149 = math.tanh %148 : vector<2x16xf32>
    %150 = arith.index_cast %c1_i32 : i32 to index
    %c0_95 = arith.constant 0 : index
    %c0_96 = arith.constant 0 : index
    %151 = vector.load %arg3[%150, %c0_95, %c0_96] : memref<8x2x16xf32, #tpu.memory_space<vmem>>, vector<1x2x16xf32>
    %152 = vector.shape_cast %151 : vector<1x2x16xf32> to vector<2x16xf32>
    %153 = arith.mulf %149, %152 : vector<2x16xf32>
    %154 = arith.index_cast %c1_i32 : i32 to index
    %c0_97 = arith.constant 0 : index
    %c0_98 = arith.constant 0 : index
    %155 = vector.load %arg22[%154, %c0_97, %c0_98] : memref<8x2x16xf32, #tpu.memory_space<vmem>>, vector<1x2x16xf32>
    %156 = vector.shape_cast %155 : vector<1x2x16xf32> to vector<2x16xf32>
    %157 = vector.shape_cast %153 : vector<2x16xf32> to vector<1x2x16xf32>
    tpu.vector_store %arg22[%154, %c0_97, %c0_98], %157 {strides = array<i32>} : memref<8x2x16xf32, #tpu.memory_space<vmem>>, vector<1x2x16xf32>,
    %c2_i32 = arith.constant 2 : i32
    %cst_99 = arith.constant dense<0.000000e+00> : vector<2x16xf32>
    %158 = tpu.matmul %148, %73, %cst_99 {dimension_numbers = #tpu.dot_dimension_numbers<[1], [0], [0], [1], [0, 0, 1, 1], [], []>} : vector<2x16xf32>, vector<16x16xf32>, vector<2x16xf32> -> vector<2x16xf32>
    %159 = arith.addf %50, %158 : vector<2x16xf32>
    %160 = arith.negf %159 : vector<2x16xf32>
    %161 = math.exp %160 : vector<2x16xf32>
    %cst_100 = arith.constant 1.000000e+00 : f32
    %162 = vector.broadcast %cst_100 : f32 to vector<2x16xf32>
    %163 = arith.addf %162, %161 : vector<2x16xf32>
    %164 = arith.divf %162, %163 : vector<2x16xf32>
    %cst_101 = arith.constant dense<0.000000e+00> : vector<2x16xf32>
    %165 = tpu.matmul %148, %75, %cst_101 {dimension_numbers = #tpu.dot_dimension_numbers<[1], [0], [0], [1], [0, 0, 1, 1], [], []>} : vector<2x16xf32>, vector<16x16xf32>, vector<2x16xf32> -> vector<2x16xf32>
    %166 = arith.addf %57, %165 : vector<2x16xf32>
    %167 = arith.negf %166 : vector<2x16xf32>
    %168 = math.exp %167 : vector<2x16xf32>
    %cst_102 = arith.constant 1.000000e+00 : f32
    %169 = vector.broadcast %cst_102 : f32 to vector<2x16xf32>
    %170 = arith.addf %169, %168 : vector<2x16xf32>
    %171 = arith.divf %169, %170 : vector<2x16xf32>
    %cst_103 = arith.constant dense<0.000000e+00> : vector<2x16xf32>
    %172 = tpu.matmul %148, %77, %cst_103 {dimension_numbers = #tpu.dot_dimension_numbers<[1], [0], [0], [1], [0, 0, 1, 1], [], []>} : vector<2x16xf32>, vector<16x16xf32>, vector<2x16xf32> -> vector<2x16xf32>
    %173 = arith.addf %64, %172 : vector<2x16xf32>
    %174 = math.tanh %173 : vector<2x16xf32>
    %cst_104 = arith.constant dense<0.000000e+00> : vector<2x16xf32>
    %175 = tpu.matmul %148, %79, %cst_104 {dimension_numbers = #tpu.dot_dimension_numbers<[1], [0], [0], [1], [0, 0, 1, 1], [], []>} : vector<2x16xf32>, vector<16x16xf32>, vector<2x16xf32> -> vector<2x16xf32>
    %176 = arith.addf %71, %175 : vector<2x16xf32>
    %177 = arith.negf %176 : vector<2x16xf32>
    %178 = math.exp %177 : vector<2x16xf32>
    %cst_105 = arith.constant 1.000000e+00 : f32
    %179 = vector.broadcast %cst_105 : f32 to vector<2x16xf32>
    %180 = arith.addf %179, %178 : vector<2x16xf32>
    %181 = arith.divf %179, %180 : vector<2x16xf32>
    %182 = arith.mulf %171, %146 : vector<2x16xf32>
    %183 = arith.mulf %164, %174 : vector<2x16xf32>
    %184 = arith.addf %182, %183 : vector<2x16xf32>
    %185 = math.tanh %184 : vector<2x16xf32>
    %186 = arith.mulf %181, %185 : vector<2x16xf32>
    %187 = math.tanh %186 : vector<2x16xf32>
    %188 = arith.index_cast %c2_i32 : i32 to index
    %c0_106 = arith.constant 0 : index
    %c0_107 = arith.constant 0 : index
    %189 = vector.load %arg3[%188, %c0_106, %c0_107] : memref<8x2x16xf32, #tpu.memory_space<vmem>>, vector<1x2x16xf32>
    %190 = vector.shape_cast %189 : vector<1x2x16xf32> to vector<2x16xf32>
    %191 = arith.mulf %187, %190 : vector<2x16xf32>
    %192 = arith.index_cast %c2_i32 : i32 to index
    %c0_108 = arith.constant 0 : index
    %c0_109 = arith.constant 0 : index
    %193 = vector.load %arg22[%192, %c0_108, %c0_109] : memref<8x2x16xf32, #tpu.memory_space<vmem>>, vector<1x2x16xf32>
    %194 = vector.shape_cast %193 : vector<1x2x16xf32> to vector<2x16xf32>
    %195 = vector.shape_cast %191 : vector<2x16xf32> to vector<1x2x16xf32>
    tpu.vector_store %arg22[%192, %c0_108, %c0_109], %195 {strides = array<i32>} : memref<8x2x16xf32, #tpu.memory_space<vmem>>, vector<1x2x16xf32>,
    %c3_i32 = arith.constant 3 : i32
    %cst_110 = arith.constant dense<0.000000e+00> : vector<2x16xf32>
    %196 = tpu.matmul %186, %73, %cst_110 {dimension_numbers = #tpu.dot_dimension_numbers<[1], [0], [0], [1], [0, 0, 1, 1], [], []>} : vector<2x16xf32>, vector<16x16xf32>, vector<2x16xf32> -> vector<2x16xf32>
    %197 = arith.addf %50, %196 : vector<2x16xf32>
    %198 = arith.negf %197 : vector<2x16xf32>
    %199 = math.exp %198 : vector<2x16xf32>
    %cst_111 = arith.constant 1.000000e+00 : f32
    %200 = vector.broadcast %cst_111 : f32 to vector<2x16xf32>
    %201 = arith.addf %200, %199 : vector<2x16xf32>
    %202 = arith.divf %200, %201 : vector<2x16xf32>
    %cst_112 = arith.constant dense<0.000000e+00> : vector<2x16xf32>
    %203 = tpu.matmul %186, %75, %cst_112 {dimension_numbers = #tpu.dot_dimension_numbers<[1], [0], [0], [1], [0, 0, 1, 1], [], []>} : vector<2x16xf32>, vector<16x16xf32>, vector<2x16xf32> -> vector<2x16xf32>
    %204 = arith.addf %57, %203 : vector<2x16xf32>
    %205 = arith.negf %204 : vector<2x16xf32>
    %206 = math.exp %205 : vector<2x16xf32>
    %cst_113 = arith.constant 1.000000e+00 : f32
    %207 = vector.broadcast %cst_113 : f32 to vector<2x16xf32>
    %208 = arith.addf %207, %206 : vector<2x16xf32>
    %209 = arith.divf %207, %208 : vector<2x16xf32>
    %cst_114 = arith.constant dense<0.000000e+00> : vector<2x16xf32>
    %210 = tpu.matmul %186, %77, %cst_114 {dimension_numbers = #tpu.dot_dimension_numbers<[1], [0], [0], [1], [0, 0, 1, 1], [], []>} : vector<2x16xf32>, vector<16x16xf32>, vector<2x16xf32> -> vector<2x16xf32>
    %211 = arith.addf %64, %210 : vector<2x16xf32>
    %212 = math.tanh %211 : vector<2x16xf32>
    %cst_115 = arith.constant dense<0.000000e+00> : vector<2x16xf32>
    %213 = tpu.matmul %186, %79, %cst_115 {dimension_numbers = #tpu.dot_dimension_numbers<[1], [0], [0], [1], [0, 0, 1, 1], [], []>} : vector<2x16xf32>, vector<16x16xf32>, vector<2x16xf32> -> vector<2x16xf32>
    %214 = arith.addf %71, %213 : vector<2x16xf32>
    %215 = arith.negf %214 : vector<2x16xf32>
    %216 = math.exp %215 : vector<2x16xf32>
    %cst_116 = arith.constant 1.000000e+00 : f32
    %217 = vector.broadcast %cst_116 : f32 to vector<2x16xf32>
    %218 = arith.addf %217, %216 : vector<2x16xf32>
    %219 = arith.divf %217, %218 : vector<2x16xf32>
    %220 = arith.mulf %209, %184 : vector<2x16xf32>
    %221 = arith.mulf %202, %212 : vector<2x16xf32>
    %222 = arith.addf %220, %221 : vector<2x16xf32>
    %223 = math.tanh %222 : vector<2x16xf32>
    %224 = arith.mulf %219, %223 : vector<2x16xf32>
    %225 = math.tanh %224 : vector<2x16xf32>
    %226 = arith.index_cast %c3_i32 : i32 to index
    %c0_117 = arith.constant 0 : index
    %c0_118 = arith.constant 0 : index
    %227 = vector.load %arg3[%226, %c0_117, %c0_118] : memref<8x2x16xf32, #tpu.memory_space<vmem>>, vector<1x2x16xf32>
    %228 = vector.shape_cast %227 : vector<1x2x16xf32> to vector<2x16xf32>
    %229 = arith.mulf %225, %228 : vector<2x16xf32>
    %230 = arith.index_cast %c3_i32 : i32 to index
    %c0_119 = arith.constant 0 : index
    %c0_120 = arith.constant 0 : index
    %231 = vector.load %arg22[%230, %c0_119, %c0_120] : memref<8x2x16xf32, #tpu.memory_space<vmem>>, vector<1x2x16xf32>
    %232 = vector.shape_cast %231 : vector<1x2x16xf32> to vector<2x16xf32>
    %233 = vector.shape_cast %229 : vector<2x16xf32> to vector<1x2x16xf32>
    tpu.vector_store %arg22[%230, %c0_119, %c0_120], %233 {strides = array<i32>} : memref<8x2x16xf32, #tpu.memory_space<vmem>>, vector<1x2x16xf32>,
    %c4_i32 = arith.constant 4 : i32
    %cst_121 = arith.constant dense<0.000000e+00> : vector<2x16xf32>
    %234 = tpu.matmul %224, %73, %cst_121 {dimension_numbers = #tpu.dot_dimension_numbers<[1], [0], [0], [1], [0, 0, 1, 1], [], []>} : vector<2x16xf32>, vector<16x16xf32>, vector<2x16xf32> -> vector<2x16xf32>
    %235 = arith.addf %50, %234 : vector<2x16xf32>
    %236 = arith.negf %235 : vector<2x16xf32>
    %237 = math.exp %236 : vector<2x16xf32>
    %cst_122 = arith.constant 1.000000e+00 : f32
    %238 = vector.broadcast %cst_122 : f32 to vector<2x16xf32>
    %239 = arith.addf %238, %237 : vector<2x16xf32>
    %240 = arith.divf %238, %239 : vector<2x16xf32>
    %cst_123 = arith.constant dense<0.000000e+00> : vector<2x16xf32>
    %241 = tpu.matmul %224, %75, %cst_123 {dimension_numbers = #tpu.dot_dimension_numbers<[1], [0], [0], [1], [0, 0, 1, 1], [], []>} : vector<2x16xf32>, vector<16x16xf32>, vector<2x16xf32> -> vector<2x16xf32>
    %242 = arith.addf %57, %241 : vector<2x16xf32>
    %243 = arith.negf %242 : vector<2x16xf32>
    %244 = math.exp %243 : vector<2x16xf32>
    %cst_124 = arith.constant 1.000000e+00 : f32
    %245 = vector.broadcast %cst_124 : f32 to vector<2x16xf32>
    %246 = arith.addf %245, %244 : vector<2x16xf32>
    %247 = arith.divf %245, %246 : vector<2x16xf32>
    %cst_125 = arith.constant dense<0.000000e+00> : vector<2x16xf32>
    %248 = tpu.matmul %224, %77, %cst_125 {dimension_numbers = #tpu.dot_dimension_numbers<[1], [0], [0], [1], [0, 0, 1, 1], [], []>} : vector<2x16xf32>, vector<16x16xf32>, vector<2x16xf32> -> vector<2x16xf32>
    %249 = arith.addf %64, %248 : vector<2x16xf32>
    %250 = math.tanh %249 : vector<2x16xf32>
    %cst_126 = arith.constant dense<0.000000e+00> : vector<2x16xf32>
    %251 = tpu.matmul %224, %79, %cst_126 {dimension_numbers = #tpu.dot_dimension_numbers<[1], [0], [0], [1], [0, 0, 1, 1], [], []>} : vector<2x16xf32>, vector<16x16xf32>, vector<2x16xf32> -> vector<2x16xf32>
    %252 = arith.addf %71, %251 : vector<2x16xf32>
    %253 = arith.negf %252 : vector<2x16xf32>
    %254 = math.exp %253 : vector<2x16xf32>
    %cst_127 = arith.constant 1.000000e+00 : f32
    %255 = vector.broadcast %cst_127 : f32 to vector<2x16xf32>
    %256 = arith.addf %255, %254 : vector<2x16xf32>
    %257 = arith.divf %255, %256 : vector<2x16xf32>
    %258 = arith.mulf %247, %222 : vector<2x16xf32>
    %259 = arith.mulf %240, %250 : vector<2x16xf32>
    %260 = arith.addf %258, %259 : vector<2x16xf32>
    %261 = math.tanh %260 : vector<2x16xf32>
    %262 = arith.mulf %257, %261 : vector<2x16xf32>
    %263 = math.tanh %262 : vector<2x16xf32>
    %264 = arith.index_cast %c4_i32 : i32 to index
    %c0_128 = arith.constant 0 : index
    %c0_129 = arith.constant 0 : index
    %265 = vector.load %arg3[%264, %c0_128, %c0_129] : memref<8x2x16xf32, #tpu.memory_space<vmem>>, vector<1x2x16xf32>
    %266 = vector.shape_cast %265 : vector<1x2x16xf32> to vector<2x16xf32>
    %267 = arith.mulf %263, %266 : vector<2x16xf32>
    %268 = arith.index_cast %c4_i32 : i32 to index
    %c0_130 = arith.constant 0 : index
    %c0_131 = arith.constant 0 : index
    %269 = vector.load %arg22[%268, %c0_130, %c0_131] : memref<8x2x16xf32, #tpu.memory_space<vmem>>, vector<1x2x16xf32>
    %270 = vector.shape_cast %269 : vector<1x2x16xf32> to vector<2x16xf32>
    %271 = vector.shape_cast %267 : vector<2x16xf32> to vector<1x2x16xf32>
    tpu.vector_store %arg22[%268, %c0_130, %c0_131], %271 {strides = array<i32>} : memref<8x2x16xf32, #tpu.memory_space<vmem>>, vector<1x2x16xf32>,
    %c5_i32 = arith.constant 5 : i32
    %cst_132 = arith.constant dense<0.000000e+00> : vector<2x16xf32>
    %272 = tpu.matmul %262, %73, %cst_132 {dimension_numbers = #tpu.dot_dimension_numbers<[1], [0], [0], [1], [0, 0, 1, 1], [], []>} : vector<2x16xf32>, vector<16x16xf32>, vector<2x16xf32> -> vector<2x16xf32>
    %273 = arith.addf %50, %272 : vector<2x16xf32>
    %274 = arith.negf %273 : vector<2x16xf32>
    %275 = math.exp %274 : vector<2x16xf32>
    %cst_133 = arith.constant 1.000000e+00 : f32
    %276 = vector.broadcast %cst_133 : f32 to vector<2x16xf32>
    %277 = arith.addf %276, %275 : vector<2x16xf32>
    %278 = arith.divf %276, %277 : vector<2x16xf32>
    %cst_134 = arith.constant dense<0.000000e+00> : vector<2x16xf32>
    %279 = tpu.matmul %262, %75, %cst_134 {dimension_numbers = #tpu.dot_dimension_numbers<[1], [0], [0], [1], [0, 0, 1, 1], [], []>} : vector<2x16xf32>, vector<16x16xf32>, vector<2x16xf32> -> vector<2x16xf32>
    %280 = arith.addf %57, %279 : vector<2x16xf32>
    %281 = arith.negf %280 : vector<2x16xf32>
    %282 = math.exp %281 : vector<2x16xf32>
    %cst_135 = arith.constant 1.000000e+00 : f32
    %283 = vector.broadcast %cst_135 : f32 to vector<2x16xf32>
    %284 = arith.addf %283, %282 : vector<2x16xf32>
    %285 = arith.divf %283, %284 : vector<2x16xf32>
    %cst_136 = arith.constant dense<0.000000e+00> : vector<2x16xf32>
    %286 = tpu.matmul %262, %77, %cst_136 {dimension_numbers = #tpu.dot_dimension_numbers<[1], [0], [0], [1], [0, 0, 1, 1], [], []>} : vector<2x16xf32>, vector<16x16xf32>, vector<2x16xf32> -> vector<2x16xf32>
    %287 = arith.addf %64, %286 : vector<2x16xf32>
    %288 = math.tanh %287 : vector<2x16xf32>
    %cst_137 = arith.constant dense<0.000000e+00> : vector<2x16xf32>
    %289 = tpu.matmul %262, %79, %cst_137 {dimension_numbers = #tpu.dot_dimension_numbers<[1], [0], [0], [1], [0, 0, 1, 1], [], []>} : vector<2x16xf32>, vector<16x16xf32>, vector<2x16xf32> -> vector<2x16xf32>
    %290 = arith.addf %71, %289 : vector<2x16xf32>
    %291 = arith.negf %290 : vector<2x16xf32>
    %292 = math.exp %291 : vector<2x16xf32>
    %cst_138 = arith.constant 1.000000e+00 : f32
    %293 = vector.broadcast %cst_138 : f32 to vector<2x16xf32>
    %294 = arith.addf %293, %292 : vector<2x16xf32>
    %295 = arith.divf %293, %294 : vector<2x16xf32>
    %296 = arith.mulf %285, %260 : vector<2x16xf32>
    %297 = arith.mulf %278, %288 : vector<2x16xf32>
    %298 = arith.addf %296, %297 : vector<2x16xf32>
    %299 = math.tanh %298 : vector<2x16xf32>
    %300 = arith.mulf %295, %299 : vector<2x16xf32>
    %301 = math.tanh %300 : vector<2x16xf32>
    %302 = arith.index_cast %c5_i32 : i32 to index
    %c0_139 = arith.constant 0 : index
    %c0_140 = arith.constant 0 : index
    %303 = vector.load %arg3[%302, %c0_139, %c0_140] : memref<8x2x16xf32, #tpu.memory_space<vmem>>, vector<1x2x16xf32>
    %304 = vector.shape_cast %303 : vector<1x2x16xf32> to vector<2x16xf32>
    %305 = arith.mulf %301, %304 : vector<2x16xf32>
    %306 = arith.index_cast %c5_i32 : i32 to index
    %c0_141 = arith.constant 0 : index
    %c0_142 = arith.constant 0 : index
    %307 = vector.load %arg22[%306, %c0_141, %c0_142] : memref<8x2x16xf32, #tpu.memory_space<vmem>>, vector<1x2x16xf32>
    %308 = vector.shape_cast %307 : vector<1x2x16xf32> to vector<2x16xf32>
    %309 = vector.shape_cast %305 : vector<2x16xf32> to vector<1x2x16xf32>
    tpu.vector_store %arg22[%306, %c0_141, %c0_142], %309 {strides = array<i32>} : memref<8x2x16xf32, #tpu.memory_space<vmem>>, vector<1x2x16xf32>,
    %c6_i32 = arith.constant 6 : i32
    %cst_143 = arith.constant dense<0.000000e+00> : vector<2x16xf32>
    %310 = tpu.matmul %300, %73, %cst_143 {dimension_numbers = #tpu.dot_dimension_numbers<[1], [0], [0], [1], [0, 0, 1, 1], [], []>} : vector<2x16xf32>, vector<16x16xf32>, vector<2x16xf32> -> vector<2x16xf32>
    %311 = arith.addf %50, %310 : vector<2x16xf32>
    %312 = arith.negf %311 : vector<2x16xf32>
    %313 = math.exp %312 : vector<2x16xf32>
    %cst_144 = arith.constant 1.000000e+00 : f32
    %314 = vector.broadcast %cst_144 : f32 to vector<2x16xf32>
    %315 = arith.addf %314, %313 : vector<2x16xf32>
    %316 = arith.divf %314, %315 : vector<2x16xf32>
    %cst_145 = arith.constant dense<0.000000e+00> : vector<2x16xf32>
    %317 = tpu.matmul %300, %75, %cst_145 {dimension_numbers = #tpu.dot_dimension_numbers<[1], [0], [0], [1], [0, 0, 1, 1], [], []>} : vector<2x16xf32>, vector<16x16xf32>, vector<2x16xf32> -> vector<2x16xf32>
    %318 = arith.addf %57, %317 : vector<2x16xf32>
    %319 = arith.negf %318 : vector<2x16xf32>
    %320 = math.exp %319 : vector<2x16xf32>
    %cst_146 = arith.constant 1.000000e+00 : f32
    %321 = vector.broadcast %cst_146 : f32 to vector<2x16xf32>
    %322 = arith.addf %321, %320 : vector<2x16xf32>
    %323 = arith.divf %321, %322 : vector<2x16xf32>
    %cst_147 = arith.constant dense<0.000000e+00> : vector<2x16xf32>
    %324 = tpu.matmul %300, %77, %cst_147 {dimension_numbers = #tpu.dot_dimension_numbers<[1], [0], [0], [1], [0, 0, 1, 1], [], []>} : vector<2x16xf32>, vector<16x16xf32>, vector<2x16xf32> -> vector<2x16xf32>
    %325 = arith.addf %64, %324 : vector<2x16xf32>
    %326 = math.tanh %325 : vector<2x16xf32>
    %cst_148 = arith.constant dense<0.000000e+00> : vector<2x16xf32>
    %327 = tpu.matmul %300, %79, %cst_148 {dimension_numbers = #tpu.dot_dimension_numbers<[1], [0], [0], [1], [0, 0, 1, 1], [], []>} : vector<2x16xf32>, vector<16x16xf32>, vector<2x16xf32> -> vector<2x16xf32>
    %328 = arith.addf %71, %327 : vector<2x16xf32>
    %329 = arith.negf %328 : vector<2x16xf32>
    %330 = math.exp %329 : vector<2x16xf32>
    %cst_149 = arith.constant 1.000000e+00 : f32
    %331 = vector.broadcast %cst_149 : f32 to vector<2x16xf32>
    %332 = arith.addf %331, %330 : vector<2x16xf32>
    %333 = arith.divf %331, %332 : vector<2x16xf32>
    %334 = arith.mulf %323, %298 : vector<2x16xf32>
    %335 = arith.mulf %316, %326 : vector<2x16xf32>
    %336 = arith.addf %334, %335 : vector<2x16xf32>
    %337 = math.tanh %336 : vector<2x16xf32>
    %338 = arith.mulf %333, %337 : vector<2x16xf32>
    %339 = math.tanh %338 : vector<2x16xf32>
    %340 = arith.index_cast %c6_i32 : i32 to index
    %c0_150 = arith.constant 0 : index
    %c0_151 = arith.constant 0 : index
    %341 = vector.load %arg3[%340, %c0_150, %c0_151] : memref<8x2x16xf32, #tpu.memory_space<vmem>>, vector<1x2x16xf32>
    %342 = vector.shape_cast %341 : vector<1x2x16xf32> to vector<2x16xf32>
    %343 = arith.mulf %339, %342 : vector<2x16xf32>
    %344 = arith.index_cast %c6_i32 : i32 to index
    %c0_152 = arith.constant 0 : index
    %c0_153 = arith.constant 0 : index
    %345 = vector.load %arg22[%344, %c0_152, %c0_153] : memref<8x2x16xf32, #tpu.memory_space<vmem>>, vector<1x2x16xf32>
    %346 = vector.shape_cast %345 : vector<1x2x16xf32> to vector<2x16xf32>
    %347 = vector.shape_cast %343 : vector<2x16xf32> to vector<1x2x16xf32>
    tpu.vector_store %arg22[%344, %c0_152, %c0_153], %347 {strides = array<i32>} : memref<8x2x16xf32, #tpu.memory_space<vmem>>, vector<1x2x16xf32>,
    %c7_i32 = arith.constant 7 : i32
    %cst_154 = arith.constant dense<0.000000e+00> : vector<2x16xf32>
    %348 = tpu.matmul %338, %73, %cst_154 {dimension_numbers = #tpu.dot_dimension_numbers<[1], [0], [0], [1], [0, 0, 1, 1], [], []>} : vector<2x16xf32>, vector<16x16xf32>, vector<2x16xf32> -> vector<2x16xf32>
    %349 = arith.addf %50, %348 : vector<2x16xf32>
    %350 = arith.negf %349 : vector<2x16xf32>
    %351 = math.exp %350 : vector<2x16xf32>
    %cst_155 = arith.constant 1.000000e+00 : f32
    %352 = vector.broadcast %cst_155 : f32 to vector<2x16xf32>
    %353 = arith.addf %352, %351 : vector<2x16xf32>
    %354 = arith.divf %352, %353 : vector<2x16xf32>
    %cst_156 = arith.constant dense<0.000000e+00> : vector<2x16xf32>
    %355 = tpu.matmul %338, %75, %cst_156 {dimension_numbers = #tpu.dot_dimension_numbers<[1], [0], [0], [1], [0, 0, 1, 1], [], []>} : vector<2x16xf32>, vector<16x16xf32>, vector<2x16xf32> -> vector<2x16xf32>
    %356 = arith.addf %57, %355 : vector<2x16xf32>
    %357 = arith.negf %356 : vector<2x16xf32>
    %358 = math.exp %357 : vector<2x16xf32>
    %cst_157 = arith.constant 1.000000e+00 : f32
    %359 = vector.broadcast %cst_157 : f32 to vector<2x16xf32>
    %360 = arith.addf %359, %358 : vector<2x16xf32>
    %361 = arith.divf %359, %360 : vector<2x16xf32>
    %cst_158 = arith.constant dense<0.000000e+00> : vector<2x16xf32>
    %362 = tpu.matmul %338, %77, %cst_158 {dimension_numbers = #tpu.dot_dimension_numbers<[1], [0], [0], [1], [0, 0, 1, 1], [], []>} : vector<2x16xf32>, vector<16x16xf32>, vector<2x16xf32> -> vector<2x16xf32>
    %363 = arith.addf %64, %362 : vector<2x16xf32>
    %364 = math.tanh %363 : vector<2x16xf32>
    %cst_159 = arith.constant dense<0.000000e+00> : vector<2x16xf32>
    %365 = tpu.matmul %338, %79, %cst_159 {dimension_numbers = #tpu.dot_dimension_numbers<[1], [0], [0], [1], [0, 0, 1, 1], [], []>} : vector<2x16xf32>, vector<16x16xf32>, vector<2x16xf32> -> vector<2x16xf32>
    %366 = arith.addf %71, %365 : vector<2x16xf32>
    %367 = arith.negf %366 : vector<2x16xf32>
    %368 = math.exp %367 : vector<2x16xf32>
    %cst_160 = arith.constant 1.000000e+00 : f32
    %369 = vector.broadcast %cst_160 : f32 to vector<2x16xf32>
    %370 = arith.addf %369, %368 : vector<2x16xf32>
    %371 = arith.divf %369, %370 : vector<2x16xf32>
    %372 = arith.mulf %361, %336 : vector<2x16xf32>
    %373 = arith.mulf %354, %364 : vector<2x16xf32>
    %374 = arith.addf %372, %373 : vector<2x16xf32>
    %375 = math.tanh %374 : vector<2x16xf32>
    %376 = arith.mulf %371, %375 : vector<2x16xf32>
    %377 = math.tanh %376 : vector<2x16xf32>
    %378 = arith.index_cast %c7_i32 : i32 to index
    %c0_161 = arith.constant 0 : index
    %c0_162 = arith.constant 0 : index
    %379 = vector.load %arg3[%378, %c0_161, %c0_162] : memref<8x2x16xf32, #tpu.memory_space<vmem>>, vector<1x2x16xf32>
    %380 = vector.shape_cast %379 : vector<1x2x16xf32> to vector<2x16xf32>
    %381 = arith.mulf %377, %380 : vector<2x16xf32>
    %382 = arith.index_cast %c7_i32 : i32 to index
    %c0_163 = arith.constant 0 : index
    %c0_164 = arith.constant 0 : index
    %383 = vector.load %arg22[%382, %c0_163, %c0_164] : memref<8x2x16xf32, #tpu.memory_space<vmem>>, vector<1x2x16xf32>
    %384 = vector.shape_cast %383 : vector<1x2x16xf32> to vector<2x16xf32>
    %385 = vector.shape_cast %381 : vector<2x16xf32> to vector<1x2x16xf32>
    tpu.vector_store %arg22[%382, %c0_163, %c0_164], %385 {strides = array<i32>} : memref<8x2x16xf32, #tpu.memory_space<vmem>>, vector<1x2x16xf32>,
    %c8_i32 = arith.constant 8 : i32
    %c0_165 = arith.constant 0 : index
    %c0_166 = arith.constant 0 : index
    %c0_167 = arith.constant 0 : index
    %386 = vector.load %arg22[%c0_165, %c0_166, %c0_167] : memref<8x2x16xf32, #tpu.memory_space<vmem>>, vector<8x2x16xf32>
    %c0_168 = arith.constant 0 : index
    %c0_169 = arith.constant 0 : index
    %387 = vector.load %arg17[%c0_168, %c0_169] : memref<16x2xf32, #tpu.memory_space<vmem>>, vector<16x2xf32>
    %388 = vector.shape_cast %387 : vector<16x2xf32> to vector<1x16x2xf32>
    %389 = vector.broadcast %388 : vector<1x16x2xf32> to vector<8x16x2xf32>
    "tpu.trace_start"() <{level = 10 : i32, message = "tbd,tdk->tbk"}> : () -> ()
    %cst_170 = arith.constant dense<0.000000e+00> : vector<8x2x2xf32>
    %390 = tpu.matmul %386, %389, %cst_170 {dimension_numbers = #tpu.dot_dimension_numbers<[2], [1], [1], [2], [0, 0, 0, 1, 1, 2], [0], [0]>} : vector<8x2x16xf32>, vector<8x16x2xf32>, vector<8x2x2xf32> -> vector<8x2x2xf32>
    "tpu.trace_stop"() : () -> ()
    %c0_171 = arith.constant 0 : index
    %c0_172 = arith.constant 0 : index
    %391 = vector.load %arg18[%c0_171, %c0_172] : memref<1x2xf32, #tpu.memory_space<vmem>>, vector<1x2xf32>
    %392 = vector.shape_cast %391 : vector<1x2xf32> to vector<1x1x2xf32>
    %393 = vector.broadcast %392 : vector<1x1x2xf32> to vector<8x2x2xf32>
    %394 = arith.addf %390, %393 : vector<8x2x2xf32>
    %c0_173 = arith.constant 0 : index
    %c0_174 = arith.constant 0 : index
    %c0_175 = arith.constant 0 : index
    %395 = vector.load %arg19[%c0_173, %c0_174, %c0_175] : memref<8x2x2xf32, #tpu.memory_space<vmem>>, vector<8x2x2xf32>
    tpu.vector_store %arg19[%c0_173, %c0_174, %c0_175], %394 {strides = array<i32>} : memref<8x2x2xf32, #tpu.memory_space<vmem>>, vector<8x2x2xf32>,
    return
  }
}

</mosaic_0001>

<bundles_post_ra>
// kernel: tpu_custom_call.1
= control target key start
LH: loop header
LB: loop body
LE: loop exit
PB: predicated region body
PF: predicated region fallthrough
CT: control target
= control target key end

     0   :  { %s3092_s0 = inlined_call_operand.vmem [shape: f32[2,16], index: 0, kind: input, shape index: {}]   ;;  %s3093_s1 = inlined_call_operand.hbm [shape: f32[2,16], index: 1, kind: input, shape index: {}]   ;;  %s3094_s2 = inlined_call_operand.hbm [shape: f32[2,8], index: 2, kind: input, shape index: {}]   ;;  %s3095_s3 = inlined_call_operand.vmem [shape: f32[8,2,16], index: 3, kind: input, shape index: {}]   ;;  %s3096_s4 = inlined_call_operand.vmem [shape: f32[16,32], index: 4, kind: input, shape index: {}]   ;;  %s3097_s5 = inlined_call_operand.vmem [shape: f32[16,32], index: 5, kind: input, shape index: {}]   ;;  %s3098_s6 = inlined_call_operand.hbm [shape: f32[1,32], index: 6, kind: input, shape index: {}]   ;;  %s3099_s7 = inlined_call_operand.vmem [shape: f32[32,16], index: 7, kind: input, shape index: {}]   ;;  %s3100_s8 = inlined_call_operand.hbm [shape: f32[1,16], index: 8, kind: input, shape index: {}]   ;;  %s3101_s9 = inlined_call_operand.hbm [shape: f32[16,16], index: 9, kind: input, shape index: {}]   ;;  %s3102_s10 = inlined_call_operand.hbm [shape: f32[1,16], index: 10, kind: input, shape index: {}]   ;;  %s3103_s11 = inlined_call_operand.vmem [shape: f32[8,16], index: 11, kind: input, shape index: {}]   ;;  %s3104_s12 = inlined_call_operand.hbm [shape: f32[16,16], index: 12, kind: input, shape index: {}]   ;;  %s3105_s13 = inlined_call_operand.hbm [shape: f32[1,16], index: 13, kind: input, shape index: {}]   ;;  %s3106_s14 = inlined_call_operand.hbm [shape: f32[4,16,16], index: 14, kind: input, shape index: {}]   ;;  %s3107_s15 = inlined_call_operand.hbm [shape: f32[4,16,16], index: 15, kind: input, shape index: {}]   ;;  %s3108_s16 = inlined_call_operand.vmem [shape: f32[4,1,16], index: 16, kind: input, shape index: {}]   ;;  %s3109_s17 = inlined_call_operand.vmem [shape: f32[16,2], index: 17, kind: input, shape index: {}]   ;;  %s3110_s18 = inlined_call_operand.vmem [shape: f32[1,2], index: 18, kind: input, shape index: {}]   ;;  %s3111_s19 = inlined_call_operand.vmem [shape: f32[8,2,2], index: 19, kind: output, shape index: {0}]   ;;  %s3112_s20 = inlined_call_operand.hbm [shape: f32[2,8], index: 20, kind: output, shape index: {1}]   ;;  %s3113_s21 = inlined_call_operand.hbm [shape: f32[2,8], index: 21, kind: output, shape index: {2}]  }
   0x1   :  { %3117 = sst [smem:[#allocation31_spill]] %s3092_s0 }
   0x2   :  { %3118 = sst [smem:[#allocation32_spill]] %s3093_s1 }
   0x3   :  { %3119 = sst [smem:[#allocation33_spill]] %s3094_s2 }
   0x4   :  { %3120 = sst [smem:[#allocation34_spill]] %s3095_s3 }
   0x5   :  { %3121 = sst [smem:[#allocation35_spill]] %s3096_s4 }
   0x6   :  { %3122 = sst [smem:[#allocation36_spill]] %s3097_s5 }
   0x7   :  { %27 = vsyncpa [#allocation4], 0 }
   0x8   :  { %28 = vsyncpa [#allocation7], 0 }
   0x9   :  { %29 = vsyncpa [#allocation10], 0 }
   0xa   :  { %30 = vsyncpa [#allocation13], 0 }
   0xb   :  { %31 = vsyncpa [#allocation16], 0 }
   0xc   :  { %32 = vsyncpa [#allocation19], 0 }
   0xd   :  { %33 = vsyncpa [#allocation5], 0  ;;  %s3123_s26 = sld [smem:[#allocation33_spill]] }
  0x13   :  { %s53_s27 = sshll.u32 %s3123_s26, 4  ;;  %s54_s27 = int_to_ptr.hbm [resolvable:$true] %s53_s27 }
  0x14   :  { %34 = vsyncpa [#allocation22], 0  ;;  %s2577_s3 = smov [#allocation6]   ;;  %s83_s4 = sshll.u32 %s3100_s8, 4  ;;  %s84_s4 = int_to_ptr.hbm [resolvable:$true] %s83_s4 }
  0x15   :  { %s55_s28 = sshll.u32 %s2577_s3, 4  ;;  %s2578_s30 = smov [#allocation9]   ;;  %s56_s28 = int_to_ptr.vmem [resolvable:$true] %s55_s28 }
  0x16   :  { %58 = dma.hbm_to_vmem [thread:$0]  %s54_s27, 32, %s56_s28, [#allocation7]  }
  0x17   :  { %s85_s5 = sshll.u32 %s2578_s30, 4  ;;  %s107_s1 = sshll.u32 %s3102_s10, 4  ;;  %s86_s5 = int_to_ptr.vmem [resolvable:$true] %s85_s5  ;;  %s108_s1 = int_to_ptr.hbm [resolvable:$true] %s107_s1 }
  0x18   :  { %88 = dma.hbm_to_vmem [thread:$0]  %s84_s4, 16, %s86_s5, [#allocation10]  }
  0x19   :  { %s133_s25 = sshll.u32 %s3105_s13, 4  ;;  %s2579_s26 = smov [#allocation12]   ;;  %s134_s25 = int_to_ptr.hbm [resolvable:$true] %s133_s25 }
  0x1a   :  { %s109_s3 = sshll.u32 %s2579_s26, 4  ;;  %s2580_s8 = smov [#allocation15]   ;;  %s110_s3 = int_to_ptr.vmem [resolvable:$true] %s109_s3 }
  0x1b   :  { %112 = dma.hbm_to_vmem [thread:$0]  %s108_s1, 16, %s110_s3, [#allocation13]  }
  0x1c   :  { %s135_s27 = sshll.u32 %s2580_s8, 4  ;;  %s3124_s0 = sld [smem:[#allocation32_spill]]  ;;  %s136_s27 = int_to_ptr.vmem [resolvable:$true] %s135_s27 }
  0x1d   :  { %138 = dma.hbm_to_vmem [thread:$0]  %s134_s25, 16, %s136_s27, [#allocation16]  }
  0x1e   :  { %s70_s5 = sshll.u32 %s3098_s6, 4  ;;  %s2581_s22 = smov [#allocation3]   ;;  %s71_s5 = int_to_ptr.hbm [resolvable:$true] %s70_s5 }
  0x1f   :  { %s44_s13 = sshll.u32 %s2581_s22, 4  ;;  %s2582_s23 = smov [#allocation8]   ;;  %s45_s13 = int_to_ptr.vmem [resolvable:$true] %s44_s13 }
  0x20   :  { %s72_s1 = sshll.u32 %s2582_s23, 4  ;;  %s93_s26 = sshll.u32 %s3101_s9, 4  ;;  %s73_s1 = int_to_ptr.vmem [resolvable:$true] %s72_s1  ;;  %s94_s26 = int_to_ptr.hbm [resolvable:$true] %s93_s26 }
  0x21   :  { %75 = dma.hbm_to_vmem [thread:$0]  %s71_s5, 16, %s73_s1, [#allocation7]  }
  0x22   :  { %s42_s30 = sshll.u32 %s3124_s0, 4  ;;  %s2583_s3 = smov [#allocation11]   ;;  %s43_s30 = int_to_ptr.hbm [resolvable:$true] %s42_s30 }
  0x23   :  { %47 = dma.hbm_to_vmem [thread:$0]  %s43_s30, 32, %s45_s13, [#allocation4]  }
  0x24   :  { %s95_s25 = sshll.u32 %s2583_s3, 4  ;;  %s119_s6 = sshll.u32 %s3104_s12, 4  ;;  %s96_s25 = int_to_ptr.vmem [resolvable:$true] %s95_s25  ;;  %s120_s6 = int_to_ptr.hbm [resolvable:$true] %s119_s6 }
  0x25   :  { %s2584_s28 = smov 128   ;;  %s2585_s29 = smov 8  }
  0x26   :  { %101 = dma.hbm_to_vmem [thread:$0]  %s94_s26, 256, %s96_s25, [#allocation10], %s2584_s28, %s2584_s28, %s2585_s29  }
  0x27   :  { %s2586_s0 = smov [#allocation14]   ;;  %s143_s9 = sshll.u32 %s3106_s14, 4  ;;  %s144_s9 = int_to_ptr.hbm [resolvable:$true] %s143_s9 }
  0x28   :  { %s121_s30 = sshll.u32 %s2586_s0, 4  ;;  %s156_s13 = sshll.u32 %s3107_s15, 4  ;;  %s122_s30 = int_to_ptr.vmem [resolvable:$true] %s121_s30  ;;  %s157_s13 = int_to_ptr.hbm [resolvable:$true] %s156_s13 }
  0x29   :  { %127 = dma.hbm_to_vmem [thread:$0]  %s120_s6, 256, %s122_s30, [#allocation13], %s2584_s28, %s2584_s28, %s2585_s29  }
  0x2a   :  { %s2587_s23 = smov [#allocation17]   ;;  %s2588_s12 = smov [#allocation18]  }
  0x2b   :  { %s145_s1 = sshll.u32 %s2587_s23, 4  ;;  %s158_s24 = sshll.u32 %s2588_s12, 4  ;;  %s146_s1 = int_to_ptr.vmem [resolvable:$true] %s145_s1  ;;  %s159_s24 = int_to_ptr.vmem [resolvable:$true] %s158_s24 }
  0x2c   :  { %151 = dma.hbm_to_vmem [thread:$0]  %s144_s9, 1024, %s146_s1, [#allocation16], %s2584_s28, %s2584_s28, %s2585_s29  }
  0x2d   :  { %164 = dma.hbm_to_vmem [thread:$0]  %s157_s13, 1024, %s159_s24, [#allocation19], %s2584_s28, %s2584_s28, %s2585_s29  }
  0x2e   :  { %2561 = dma.done.wait [#allocation4], 32  }
  0x2f   :  { %2562 = vsyncadd [#allocation4], 4294967264 }
  0x30   :  { %2563 = dma.done.wait [#allocation7], 48  }
  0x31   :  { %2564 = vsyncadd [#allocation7], 4294967248 }
  0x32   :  { %2565 = dma.done.wait [#allocation10], 272  }
  0x33   :  { %2566 = vsyncadd [#allocation10], 4294967024 }
  0x34   :  { %2567 = dma.done.wait [#allocation13], 272  }
  0x35   :  { %2568 = vsyncadd [#allocation13], 4294967024 }
  0x36   :  { %2569 = dma.done.wait [#allocation16], 1040  }
  0x37   :  { %2570 = vsyncadd [#allocation16], 4294966256 }
  0x38   :  { %2571 = dma.done.wait [#allocation19], 1024  }
  0x39   :  { %2572 = vsyncadd [#allocation19], 4294966272  ;;  %s3125_s2 = sld [smem:[#allocation36_spill]]  ;;  %v212_v4 = vld [vmem:[#allocation3] sm:$0x3]  ;;  %vm217_vm0 = vcmask 130048  }
  0x3a   :  { %s3126_s25 = sld [smem:[#allocation35_spill]]  ;;  %v273_v6 = vld [vmem:[%s3099_s7 + $0x18] sm:$0xff]  ;;  %v272_v7 = vld [vmem:[%s3099_s7 + $0x10] sm:$0xff]  ;;  %v271_v8 = vld [vmem:[%s3099_s7 + $0x8] sm:$0xff]  ;;  %vm278_vm1 = vcmask 261120   ;;  %vm332_vm2 = vcmask 58368  }
  0x3b   :  { %s3127_s30 = sld [smem:[#allocation31_spill]]  ;;  %294 = vmatpush.msra.mxu2 %v273_v6  ;;  %v270_v9 = vld [vmem:[%s3099_s7] sm:$0xff]  ;;  %v2118_v10 = vld [vmem:[#allocation8] ss:$0 sm:$0xff]  ;;  %v303_v17 = vld [vmem:[#allocation11] sm:$0xff]  ;;  %s2589_s24 = smov 120  }
  0x3c   :  { %v304_v16 = vld [vmem:[#allocation11 + $0x8] sm:$0xff]  ;;  %v2119_v18 = vld [vmem:[#allocation9] ss:$0 sm:$0xff]  ;;  %v2120_v24 = vld [vmem:[#allocation12] ss:$0 sm:$0xff]  ;;  %vm372_vm3 = vcmask 64512  }
  0x3d   :  { %295 = vmatpush.msra.mxu2 %v272_v7  ;;  %326 = vmatpush.msra.mxu3 %v304_v16  ;;  %v351_v22 = vld [vmem:[#allocation14 + $0x8] sm:$0xff]  ;;  %v349_v23 = vld [vmem:[%s3103_s11] sm:$0xff]  ;;  %v350_v30 = vld [vmem:[#allocation14] sm:$0xff]  ;;  %v2590_v58 = vmov 0.0   ;;  %s3128_s6 = sld [smem:[#allocation34_spill]]  ;;  %s2591_s5 = smov [#allocation20]  }
  0x3e   :  { %v403_v31 = vld [vmem:[#allocation17 + $0x8] sm:$0xff]  ;;  %v433_v32 = vld [vmem:[#allocation17 + $0x18] sm:$0xff]  ;;  %v339_v33 = vld [vmem:[#allocation6] sm:$0x3]  ;;  %s1987_s22 = sshll.u32 %s2591_s5, 4  ;;  %s1989_s1 = sshll.u32 %s3112_s20, 4  ;;  %s1988_s22 = int_to_ptr.vmem [resolvable:$true] %s1987_s22  ;;  %s1990_s1 = int_to_ptr.hbm [resolvable:$true] %s1989_s1 }
  0x3f   :  { %v216_v0 = vld [vmem:[%s3125_s2 + $0x8] sm:$0xff]  ;;  %v215_v2 = vld [vmem:[%s3125_s2] sm:$0xff]  ;;  %296 = vmatpush.msra.mxu2 %v271_v8  ;;  %327 = vmatpush.msra.mxu3 %v303_v17  ;;  %v489_v39 = vld [vmem:[#allocation17 + $0x38] sm:$0xff]  ;;  %s2592_s7 = smov [#allocation21]  }
  0x40   :  { %v214_v1 = vld [vmem:[%s3126_s25 + $0x8] sm:$0xff]  ;;  %235 = vmatpush.msra.mxu0 %v216_v0  ;;  %v213_v3 = vld [vmem:[%s3126_s25] sm:$0xff]  ;;  %v2771_v45 = vld [vmem:[#allocation18 + $0x18] sm:$0xff]  ;;  %s1998_s12 = sshll.u32 %s2592_s7, 4  ;;  %s1999_s12 = int_to_ptr.vmem [resolvable:$true] %s1998_s12 }
  0x41   :  { %258 = vmatpush.msra.mxu1 %v214_v1  ;;  %v211_v5 = vld [vmem:[%s3127_s30] sm:$0x3]  ;;  %297 = vmatpush.msra.mxu2 %v270_v9  ;;  %v461_v38 = vld [vmem:[#allocation17 + $0x28] sm:$0xff]  ;;  %v432_v41 = vld [vmem:[#allocation17 + $0x10] sm:$0xff] }
  0x42   :  { %236 = vmatpush.msra.mxu0 %v215_v2  ;;  %425 = vmatpush.msrb.mxu3 %v403_v31  ;;  %v402_v40 = vld [vmem:[#allocation17] sm:$0xff]  ;;  %v488_v43 = vld [vmem:[#allocation17 + $0x30] sm:$0xff]  ;;  %v2769_v44 = vld [vmem:[#allocation18 + $0x8] sm:$0xff] }
  0x43   :  { %259 = vmatpush.msra.mxu1 %v213_v3  ;;  %2022 = vmatmul.msk.f32.vlgmr.msra.gmra.mxu0 %vm217_vm0, %v212_v4  ;;  %v460_v42 = vld [vmem:[#allocation17 + $0x20] sm:$0xff]  ;;  %v2777_v47 = vld [vmem:[#allocation18 + $0x10] sm:$0xff]  ;;  %v2779_v48 = vld [vmem:[#allocation18 + $0x28] sm:$0xff] }
  0x44   :  { %2023 = vmatmul.msk.f32.vlgmr.msra.gmra.mxu1 %vm217_vm0, %v211_v5  ;;  %366 = vmatpush.msrb.mxu0 %v351_v22  ;;  %v2773_v46 = vld [vmem:[#allocation18] sm:$0xff]  ;;  %v2781_v49 = vld [vmem:[#allocation18 + $0x38] sm:$0xff]  ;;  %v2787_v51 = vld [vmem:[#allocation18 + $0x30] sm:$0xff] }
  0x45   :  { %391 = vmatpush.msrb.mxu1 %v349_v23  ;;  %453 = vmatpush.msrb.mxu2 %v433_v32  ;;  %v2785_v50 = vld [vmem:[#allocation18 + $0x20] sm:$0xff]  ;;  %v2121_v53 = vld [vmem:[#allocation15] ss:$0 sm:$0xff] }
  0x46   :  { %367 = vmatpush.msrb.mxu0 %v350_v30  ;;  %426 = vmatpush.msrb.mxu3 %v402_v40  ;;  %v2123_v60 = vld [vmem:[%s3108_s16 + $0x3] ss:$0 sm:$0xff]  ;;  %v2124_v0 = vld [vmem:[%s3108_s16] ss:$0 sm:$0xff]  ;;  %v2125_v1 = vld [vmem:[%s3108_s16 + $0x1] ss:$0 sm:$0xff] }
  0x47   :  { %509 = vmatpush.msra.mxu1 %v489_v39  ;;  %454 = vmatpush.msrb.mxu2 %v432_v41 }
  0x48   :  { %481 = vmatpush.msra.mxu0 %v461_v38 }
  0x49   :  { %510 = vmatpush.msra.mxu1 %v488_v43 }
  0x4a   :  { %482 = vmatpush.msra.mxu0 %v460_v42 }
  0x4b   :  { %2026 = vmatmul.msk.f32.vlgmr.msrb.gmra.mxu0 %vm217_vm0, %v211_v5 }
  0x4c   :  { %623 = vmatpush.msrb.mxu0 %v2779_v48 }
  0x4e   :  { %624 = vmatpush.msrb.mxu0 %v2785_v50 }
  0xc0   :  { %v238_v11 = vpop.f32.mrf.mxu0 }
  0xc1   :  { %v261_v12 = vpop.f32.mrf.mxu1 }
  0xc2   :  { %v262_v13 = vadd.f32 %v261_v12, %v238_v11 }
  0xc4   :  { %v268_v14 = vadd.f32 %v2118_v10, %v262_v13 }
  0xc6   :  { %v269_v15 = vmax.f32 %v268_v14, 0.0 }
  0xc8   :  { %2024 = vmatmul.msk.f32.vlgmr.msra.gmra.mxu2 %vm278_vm1, %v269_v15  ;;  %v369_v52 = vpop.f32.mrf.mxu0  ;;  %vm679_vm1 = vcmask 123904  }
  0xc9   :  { %583 = vmatpush.msra.mxu2 %v2771_v45 }
  0xcb   :  { %584 = vmatpush.msra.mxu2 %v2777_v47 }
 0x14b   :  { %v299_v19 = vpop.f32.mrf.mxu2 }
 0x14c   :  { %v300_v20 = vadd.f32 %v2119_v18, %v299_v19 }
 0x14e   :  { %v302_v21 = vmax.f32 %v300_v20, 0.0  ;;  %v2122_v20 = vld [vmem:[%s3108_s16 + $0x2] ss:$0 sm:$0xff] }
 0x150   :  { %2025 = vmatmul.msk.f32.vlgmr.msra.gmra.mxu3 %vm217_vm0, %v302_v21 }
 0x151   :  { %543 = vmatpush.msra.mxu3 %v2769_v44 }
 0x153   :  { %544 = vmatpush.msra.mxu3 %v2773_v46 }
 0x1d3   :  { %v329_v25 = vpop.f32.mrf.mxu3 }
 0x1d4   :  { %v330_v26 = vadd.f32 %v2120_v24, %v329_v25 }
 0x1d6   :  { %v340_v27 = vmul.f32 0.5, %v330_v26  ;;  %333 = vst.msk [vmem:[#allocation20] sm:$0x3] %vm332_vm2, %v330_v26 }
 0x1d7   :  { %1992 = dma.vmem_to_hbm [thread:$0]  %s1988_s22, 32, %s1990_s1, [#allocation5]  }
 0x1d8   :  { %v341_v28 = vmul.f32 1.442695, %v340_v27 }
 0x1da   :  { %2127 = vpow2.f32 %v341_v28 }
 0x1e0   :  { %v2128_v29 = vpop.eup %2127 }
 0x1e1   :  { %344 = vrot.lane.b32.xlu0 %v2128_v29, %s2589_s24 }
 0x1e9   :  { %335 = vrot.lane.b32.xlu0 %v330_v26, %s2589_s24  ;;  %s2000_s24 = sshll.u32 %s3113_s21, 4  ;;  %s2001_s24 = int_to_ptr.hbm [resolvable:$true] %s2000_s24 }
 0x253   :  { %v345_v34 = vpop.permute.xlu0 %344 }
 0x254   :  { %v347_v35 = vmul.f32 %v345_v34, %v339_v33 }
 0x256   :  { %v348_v36 = vadd.f32 %v347_v35, %v330_v26 }
 0x258   :  { %2027 = vmatmul.msk.f32.vlgmr.msrb.gmra.mxu1 %vm372_vm3, %v348_v36 }
 0x259   :  { %645 = vmatpush.msrb.mxu1 %v2781_v49 }
 0x25b   :  { %v336_v37 = vpop.permute.xlu0 %335  ;;  %646 = vmatpush.msrb.mxu1 %v2787_v51 }
 0x25c   :  { %338 = vst.msk [vmem:[#allocation21] sm:$0x3] %vm332_vm2, %v336_v37 }
 0x25d   :  { %2003 = dma.vmem_to_hbm [thread:$0]  %s1999_s12, 32, %s2001_s24, [#allocation22]  }
 0x2d5   :  { %v393_v54 = vpop.f32.mrf.mxu1 }
 0x2d6   :  { %v394_v55 = vadd.f32 %v393_v54, %v369_v52 }
 0x2d8   :  { %v400_v56 = vadd.f32 %v2121_v53, %v394_v55 }
 0x2da   :  { %v401_v57 = vmax.f32 %v400_v56, 0.0 }
 0x2dc   :  { %2028 = vmatmul.msk.f32.vlgmr.msrb.gmra.mxu3 %vm217_vm0, %v401_v57  ;;  %2030 = vmatmul.msk.f32.vlgmr.msrb.gmra.mxu2 %vm217_vm0, %v401_v57 }
 0x2dd   :  { %2032 = vmatmul.msk.f32.vlgmr.msra.gmra.mxu0 %vm217_vm0, %v401_v57  ;;  %2034 = vmatmul.msk.f32.vlgmr.msra.gmra.mxu1 %vm217_vm0, %v401_v57 }
 0x2de   :  { %698 = vmatpush.msrb.mxu3 %v2769_v44  ;;  %738 = vmatpush.msrb.mxu2 %v2771_v45 }
 0x2df   :  { %778 = vmatpush.msra.mxu0 %v2779_v48  ;;  %800 = vmatpush.msra.mxu1 %v2781_v49 }
 0x2e0   :  { %699 = vmatpush.msrb.mxu3 %v2773_v46  ;;  %739 = vmatpush.msrb.mxu2 %v2777_v47 }
 0x2e1   :  { %779 = vmatpush.msra.mxu0 %v2785_v50  ;;  %801 = vmatpush.msra.mxu1 %v2787_v51 }
 0x2e4   :  { %545 = vmatmul.f32.vlgmr.msra.gmra.mxu3 %v2590_v58  ;;  %585 = vmatmul.f32.vlgmr.msra.gmra.mxu2 %v2590_v58 }
 0x2e5   :  { %625 = vmatmul.f32.vlgmr.msrb.gmra.mxu0 %v2590_v58  ;;  %647 = vmatmul.f32.vlgmr.msrb.gmra.mxu1 %v2590_v58 }
 0x2e6   :  { %854 = vmatpush.msra.mxu3 %v2769_v44  ;;  %894 = vmatpush.msra.mxu2 %v2771_v45 }
 0x2e7   :  { %934 = vmatpush.msrb.mxu0 %v2779_v48  ;;  %956 = vmatpush.msrb.mxu1 %v2781_v49 }
 0x2e8   :  { %855 = vmatpush.msra.mxu3 %v2773_v46  ;;  %895 = vmatpush.msra.mxu2 %v2777_v47 }
 0x2e9   :  { %935 = vmatpush.msrb.mxu0 %v2785_v50  ;;  %957 = vmatpush.msrb.mxu1 %v2787_v51 }
 0x35a   :  { %v512_v59 = vpop.f32.mrf.mxu1  ;;  %v484_v14 = vpop.f32.mrf.mxu0 }
 0x35b   :  { %v2816_v63 = vadd.f32 %v2123_v60, %v512_v59  ;;  %v2834_v22 = vadd.f32 %v2122_v20, %v484_v14 }
 0x35f   :  { %v428_v61 = vpop.f32.mrf.mxu3  ;;  %v456_v62 = vpop.f32.mrf.mxu2 }
 0x360   :  { %v2825_v5 = vadd.f32 %v2124_v0, %v428_v61  ;;  %v2827_v6 = vadd.f32 %v2125_v1, %v456_v62 }
 0x362   :  { %v648_v2 = vpop.f32.mrf.mxu1  ;;  %v626_v21 = vpop.f32.mrf.mxu0 }
 0x363   :  { %v651_v3 = vadd.f32 %v648_v2, %v2816_v63  ;;  %v629_v25 = vadd.f32 %v626_v21, %v2834_v22 }
 0x365   :  { %v2037_v4 = vmul.f32 -1.442695, %v651_v3 }
 0x367   :  { %2129 = vpow2.f32 %v2037_v4  ;;  %v546_v7 = vpop.f32.mrf.mxu3  ;;  %v586_v8 = vpop.f32.mrf.mxu2 }
 0x368   :  { %v549_v9 = vadd.f32 %v546_v7, %v2825_v5  ;;  %v589_v10 = vadd.f32 %v586_v8, %v2827_v6  ;;  %v677_v7 = vld [vmem:[%s3128_s6] sm:$0x3] }
 0x36a   :  { %v2035_v11 = vmul.f32 -1.442695, %v549_v9  ;;  %v2036_v12 = vmul.f32 -1.442695, %v589_v10 }
 0x36c   :  { %2131 = vpow2.f32 %v2035_v11 }
 0x36d   :  { %v2130_v13 = vpop.eup %2129  ;;  %2133 = vpow2.f32 %v2036_v12 }
 0x36e   :  { %v655_v15 = vadd.f32 1.0, %v2130_v13 }
 0x370   :  { %2135 = vrcp.f32 %v655_v15  ;;  %v667_v61 = vand.u32 2147483648, %v655_v15  ;;  %vm661_vm13 = vweird.f32 %v655_v15  ;;  %v665_v62 = vand.u32 2147483647, %v655_v15 }
 0x372   :  { %v2132_v16 = vpop.eup %2131  ;;  %v668_v1 = vor.u32 1.1754944e-38, %v667_v61  ;;  %vm666_vm15 = vcmp.eq.f32.partialorder %v665_v62, 8.507059e+37 }
 0x373   :  { %v2134_v17 = vpop.eup %2133  ;;  %v553_v18 = vadd.f32 1.0, %v2132_v16 }
 0x374   :  { %v593_v19 = vadd.f32 1.0, %v2134_v17 }
 0x375   :  { %2137 = vrcp.f32 %v553_v18  ;;  %v565_v31 = vand.u32 2147483648, %v553_v18  ;;  %v563_v34 = vand.u32 2147483647, %v553_v18  ;;  %vm559_vm6 = vweird.f32 %v553_v18 }
 0x376   :  { %2139 = vrcp.f32 %v593_v19  ;;  %v2136_v23 = vpop.eup %2135  ;;  %v605_v35 = vand.u32 2147483648, %v593_v19  ;;  %v603_v37 = vand.u32 2147483647, %v593_v19  ;;  %vm599_vm8 = vweird.f32 %v593_v19 }
 0x377   :  { %v657_v29 = vmul.f32 %v2136_v23, %v655_v15  ;;  %2141 = vtanh.f32 %v629_v25  ;;  %v566_v40 = vor.u32 1.1754944e-38, %v565_v31  ;;  %vm564_vm9 = vcmp.eq.f32.partialorder %v563_v34, 8.507059e+37 }
 0x378   :  { %v606_v43 = vor.u32 1.1754944e-38, %v605_v35  ;;  %vm604_vm11 = vcmp.eq.f32.partialorder %v603_v37, 8.507059e+37  ;;  %vm662_vm12 = vweird.f32 %v2136_v23 }
 0x379   :  { %v658_v38 = vsub.f32 1.0, %v657_v29  ;;  %vm663_vm14 = vmor %vm661_vm13, %vm662_vm12 }
 0x37b   :  { %v2138_v24 = vpop.eup %2137  ;;  %v659_v55 = vmul.f32 %v2136_v23, %v658_v38 }
 0x37c   :  { %v2140_v26 = vpop.eup %2139  ;;  %v555_v27 = vmul.f32 %v2138_v24, %v553_v18  ;;  %vm560_vm4 = vweird.f32 %v2138_v24 }
 0x37d   :  { %v595_v28 = vmul.f32 %v2140_v26, %v593_v19  ;;  %vm600_vm5 = vweird.f32 %v2140_v26  ;;  %vm561_vm7 = vmor %vm559_vm6, %vm560_vm4  ;;  %v2142_v52 = vpop.eup %2141  ;;  %v660_v60 = vadd.f32 %v2136_v23, %v659_v55 }
 0x37e   :  { %v556_v30 = vsub.f32 1.0, %v555_v27  ;;  %vm601_vm10 = vmor %vm599_vm8, %vm600_vm5 }
 0x37f   :  { %v596_v32 = vsub.f32 1.0, %v595_v28  ;;  %v664_v0 = vsel %vm663_vm14, %v2136_v23, %v660_v60 }
 0x380   :  { %v557_v33 = vmul.f32 %v2138_v24, %v556_v30  ;;  %v669_v3 = vsel %vm666_vm15, %v668_v1, %v664_v0 }
 0x381   :  { %v597_v36 = vmul.f32 %v2140_v26, %v596_v32 }
 0x382   :  { %v558_v39 = vadd.f32 %v2138_v24, %v557_v33 }
 0x383   :  { %v598_v41 = vadd.f32 %v2140_v26, %v597_v36 }
 0x384   :  { %v562_v42 = vsel %vm561_vm7, %v2138_v24, %v558_v39 }
 0x385   :  { %v567_v53 = vsel %vm564_vm9, %v566_v40, %v562_v42  ;;  %v602_v54 = vsel %vm601_vm10, %v2140_v26, %v598_v41 }
 0x386   :  { %v672_v56 = vmul.f32 %v2142_v52, %v567_v53  ;;  %v607_v57 = vsel %vm604_vm11, %v606_v43, %v602_v54 }
 0x387   :  { %v671_v58 = vmul.f32 0.0, %v607_v57 }
 0x389   :  { %v2837_v59 = vadd.f32 %v672_v56, %v671_v58 }
 0x38b   :  { %2143 = vtanh.f32 %v2837_v59 }
 0x391   :  { %v2144_v2 = vpop.eup %2143 }
 0x392   :  { %v675_v4 = vmul.f32 %v2144_v2, %v669_v3 }
 0x394   :  { %2145 = vtanh.f32 %v675_v4  ;;  %2038 = vmatmul.msk.f32.vlgmr.msrb.gmra.mxu3 %vm217_vm0, %v675_v4  ;;  %2040 = vmatmul.msk.f32.vlgmr.msrb.gmra.mxu2 %vm217_vm0, %v675_v4 }
 0x395   :  { %2042 = vmatmul.msk.f32.vlgmr.msra.gmra.mxu0 %vm217_vm0, %v675_v4  ;;  %2043 = vmatmul.msk.f32.vlgmr.msra.gmra.mxu1 %vm217_vm0, %v675_v4 }
 0x396   :  { %1010 = vmatpush.msrb.mxu3 %v2769_v44  ;;  %1050 = vmatpush.msrb.mxu2 %v2771_v45 }
 0x397   :  { %1090 = vmatpush.msra.mxu0 %v2779_v48  ;;  %1112 = vmatpush.msra.mxu1 %v2781_v49 }
 0x398   :  { %1011 = vmatpush.msrb.mxu3 %v2773_v46  ;;  %1051 = vmatpush.msrb.mxu2 %v2777_v47 }
 0x399   :  { %1091 = vmatpush.msra.mxu0 %v2785_v50  ;;  %1113 = vmatpush.msra.mxu1 %v2787_v51 }
 0x39a   :  { %v2146_v8 = vpop.eup %2145 }
 0x39b   :  { %v678_v9 = vmul.f32 %v2146_v8, %v677_v7 }
 0x39d   :  { %680 = vst.msk [vmem:[#allocation2] sm:$0x3] %vm679_vm1, %v678_v9 }
 0x412   :  { %v803_v10 = vpop.f32.mrf.mxu1  ;;  %v781_v26 = vpop.f32.mrf.mxu0 }
 0x413   :  { %v806_v11 = vadd.f32 %v803_v10, %v2816_v63  ;;  %v784_v29 = vadd.f32 %v781_v26, %v2834_v22 }
 0x415   :  { %v2044_v12 = vmul.f32 -1.442695, %v806_v11 }
 0x417   :  { %2147 = vpow2.f32 %v2044_v12  ;;  %v701_v13 = vpop.f32.mrf.mxu3  ;;  %v741_v14 = vpop.f32.mrf.mxu2 }
 0x418   :  { %v704_v15 = vadd.f32 %v701_v13, %v2825_v5  ;;  %v744_v16 = vadd.f32 %v741_v14, %v2827_v6 }
 0x41a   :  { %v2039_v17 = vmul.f32 -1.442695, %v704_v15  ;;  %v2041_v18 = vmul.f32 -1.442695, %v744_v16 }
 0x41c   :  { %2149 = vpow2.f32 %v2039_v17 }
 0x41d   :  { %v2148_v19 = vpop.eup %2147  ;;  %2151 = vpow2.f32 %v2041_v18 }
 0x41e   :  { %v810_v20 = vadd.f32 1.0, %v2148_v19 }
 0x420   :  { %2153 = vrcp.f32 %v810_v20  ;;  %v822_v3 = vand.u32 2147483648, %v810_v20  ;;  %vm816_vm11 = vweird.f32 %v810_v20  ;;  %v820_v4 = vand.u32 2147483647, %v810_v20 }
 0x422   :  { %v2150_v21 = vpop.eup %2149  ;;  %v823_v8 = vor.u32 1.1754944e-38, %v822_v3  ;;  %vm821_vm13 = vcmp.eq.f32.partialorder %v820_v4, 8.507059e+37 }
 0x423   :  { %v2152_v23 = vpop.eup %2151  ;;  %v708_v24 = vadd.f32 1.0, %v2150_v21 }
 0x424   :  { %v748_v25 = vadd.f32 1.0, %v2152_v23 }
 0x425   :  { %2155 = vrcp.f32 %v708_v24  ;;  %v720_v35 = vand.u32 2147483648, %v708_v24  ;;  %v718_v38 = vand.u32 2147483647, %v708_v24  ;;  %vm714_vm4 = vweird.f32 %v708_v24 }
 0x426   :  { %2157 = vrcp.f32 %v748_v25  ;;  %v2154_v27 = vpop.eup %2153  ;;  %v760_v39 = vand.u32 2147483648, %v748_v25  ;;  %v758_v41 = vand.u32 2147483647, %v748_v25  ;;  %vm754_vm6 = vweird.f32 %v748_v25 }
 0x427   :  { %v812_v33 = vmul.f32 %v2154_v27, %v810_v20  ;;  %2159 = vtanh.f32 %v784_v29  ;;  %v721_v52 = vor.u32 1.1754944e-38, %v720_v35  ;;  %vm719_vm7 = vcmp.eq.f32.partialorder %v718_v38, 8.507059e+37 }
 0x428   :  { %v761_v55 = vor.u32 1.1754944e-38, %v760_v39  ;;  %vm759_vm9 = vcmp.eq.f32.partialorder %v758_v41, 8.507059e+37  ;;  %vm817_vm10 = vweird.f32 %v2154_v27 }
 0x429   :  { %v813_v42 = vsub.f32 1.0, %v812_v33  ;;  %vm818_vm12 = vmor %vm816_vm11, %vm817_vm10 }
 0x42b   :  { %v2156_v28 = vpop.eup %2155  ;;  %v814_v60 = vmul.f32 %v2154_v27, %v813_v42 }
 0x42c   :  { %v2158_v30 = vpop.eup %2157  ;;  %v710_v31 = vmul.f32 %v2156_v28, %v708_v24  ;;  %vm715_vm2 = vweird.f32 %v2156_v28 }
 0x42d   :  { %v750_v32 = vmul.f32 %v2158_v30, %v748_v25  ;;  %vm755_vm3 = vweird.f32 %v2158_v30  ;;  %vm716_vm5 = vmor %vm714_vm4, %vm715_vm2  ;;  %v2160_v56 = vpop.eup %2159  ;;  %v815_v2 = vadd.f32 %v2154_v27, %v814_v60 }
 0x42e   :  { %v711_v34 = vsub.f32 1.0, %v710_v31  ;;  %vm756_vm8 = vmor %vm754_vm6, %vm755_vm3 }
 0x42f   :  { %v751_v36 = vsub.f32 1.0, %v750_v32  ;;  %v819_v7 = vsel %vm818_vm12, %v2154_v27, %v815_v2 }
 0x430   :  { %v712_v37 = vmul.f32 %v2156_v28, %v711_v34  ;;  %v824_v10 = vsel %vm821_vm13, %v823_v8, %v819_v7 }
 0x431   :  { %v752_v40 = vmul.f32 %v2158_v30, %v751_v36 }
 0x432   :  { %v713_v43 = vadd.f32 %v2156_v28, %v712_v37 }
 0x433   :  { %v753_v53 = vadd.f32 %v2158_v30, %v752_v40 }
 0x434   :  { %v717_v54 = vsel %vm716_vm5, %v2156_v28, %v713_v43 }
 0x435   :  { %v722_v57 = vsel %vm719_vm7, %v721_v52, %v717_v54  ;;  %v757_v58 = vsel %vm756_vm8, %v2158_v30, %v753_v53 }
 0x436   :  { %v827_v61 = vmul.f32 %v2160_v56, %v722_v57  ;;  %v762_v62 = vsel %vm759_vm9, %v761_v55, %v757_v58 }
 0x437   :  { %v826_v0 = vmul.f32 %v762_v62, %v2837_v59  ;;  %v2045_v59 = vld [vmem:[%s3128_s6 + $0x2] sm:$0x3] }
 0x439   :  { %v2861_v1 = vadd.f32 %v827_v61, %v826_v0 }
 0x43b   :  { %2161 = vtanh.f32 %v2861_v1 }
 0x441   :  { %v2162_v9 = vpop.eup %2161 }
 0x442   :  { %v830_v11 = vmul.f32 %v2162_v9, %v824_v10 }
 0x444   :  { %2163 = vtanh.f32 %v830_v11  ;;  %2046 = vmatmul.msk.f32.vlgmr.msra.gmra.mxu3 %vm217_vm0, %v830_v11  ;;  %2048 = vmatmul.msk.f32.vlgmr.msra.gmra.mxu2 %vm217_vm0, %v830_v11 }
 0x445   :  { %2050 = vmatmul.msk.f32.vlgmr.msrb.gmra.mxu0 %vm217_vm0, %v830_v11  ;;  %2051 = vmatmul.msk.f32.vlgmr.msrb.gmra.mxu1 %vm217_vm0, %v830_v11 }
 0x446   :  { %1166 = vmatpush.msra.mxu3 %v2769_v44  ;;  %1206 = vmatpush.msra.mxu2 %v2771_v45 }
 0x447   :  { %1246 = vmatpush.msrb.mxu0 %v2779_v48  ;;  %1268 = vmatpush.msrb.mxu1 %v2781_v49 }
 0x448   :  { %1167 = vmatpush.msra.mxu3 %v2773_v46  ;;  %1207 = vmatpush.msra.mxu2 %v2777_v47 }
 0x449   :  { %1247 = vmatpush.msrb.mxu0 %v2785_v50  ;;  %1269 = vmatpush.msrb.mxu1 %v2787_v51 }
 0x44a   :  { %v2164_v12 = vpop.eup %2163 }
 0x44b   :  { %v834_v13 = vmul.f32 %v2164_v12, %v2045_v59 }
 0x44d   :  { %836 = vst.msk [vmem:[#allocation2 + $0x2] sm:$0x3] %vm679_vm1, %v834_v13 }
 0x4c2   :  { %v959_v14 = vpop.f32.mrf.mxu1  ;;  %v937_v30 = vpop.f32.mrf.mxu0 }
 0x4c3   :  { %v962_v15 = vadd.f32 %v959_v14, %v2816_v63  ;;  %v940_v33 = vadd.f32 %v937_v30, %v2834_v22 }
 0x4c5   :  { %v2052_v16 = vmul.f32 -1.442695, %v962_v15 }
 0x4c7   :  { %2165 = vpow2.f32 %v2052_v16  ;;  %v857_v17 = vpop.f32.mrf.mxu3  ;;  %v897_v18 = vpop.f32.mrf.mxu2 }
 0x4c8   :  { %v860_v19 = vadd.f32 %v857_v17, %v2825_v5  ;;  %v900_v20 = vadd.f32 %v897_v18, %v2827_v6 }
 0x4ca   :  { %v2047_v21 = vmul.f32 -1.442695, %v860_v19  ;;  %v2049_v23 = vmul.f32 -1.442695, %v900_v20 }
 0x4cc   :  { %2167 = vpow2.f32 %v2047_v21 }
 0x4cd   :  { %v2166_v24 = vpop.eup %2165  ;;  %2169 = vpow2.f32 %v2049_v23 }
 0x4ce   :  { %v966_v25 = vadd.f32 1.0, %v2166_v24 }
 0x4d0   :  { %2171 = vrcp.f32 %v966_v25  ;;  %v978_v10 = vand.u32 2147483648, %v966_v25  ;;  %vm972_vm9 = vweird.f32 %v966_v25  ;;  %v976_v11 = vand.u32 2147483647, %v966_v25 }
 0x4d2   :  { %v2168_v26 = vpop.eup %2167  ;;  %v979_v12 = vor.u32 1.1754944e-38, %v978_v10  ;;  %vm977_vm11 = vcmp.eq.f32.partialorder %v976_v11, 8.507059e+37 }
 0x4d3   :  { %v2170_v27 = vpop.eup %2169  ;;  %v864_v28 = vadd.f32 1.0, %v2168_v26 }
 0x4d4   :  { %v904_v29 = vadd.f32 1.0, %v2170_v27 }
 0x4d5   :  { %2173 = vrcp.f32 %v864_v28  ;;  %v876_v39 = vand.u32 2147483648, %v864_v28  ;;  %v874_v42 = vand.u32 2147483647, %v864_v28  ;;  %vm870_vm2 = vweird.f32 %v864_v28 }
 0x4d6   :  { %2175 = vrcp.f32 %v904_v29  ;;  %v2172_v31 = vpop.eup %2171  ;;  %v916_v43 = vand.u32 2147483648, %v904_v29  ;;  %v914_v53 = vand.u32 2147483647, %v904_v29  ;;  %vm910_vm4 = vweird.f32 %v904_v29 }
 0x4d7   :  { %v968_v37 = vmul.f32 %v2172_v31, %v966_v25  ;;  %2177 = vtanh.f32 %v940_v33  ;;  %v877_v56 = vor.u32 1.1754944e-38, %v876_v39  ;;  %vm875_vm5 = vcmp.eq.f32.partialorder %v874_v42, 8.507059e+37 }
 0x4d8   :  { %v917_v60 = vor.u32 1.1754944e-38, %v916_v43  ;;  %vm915_vm7 = vcmp.eq.f32.partialorder %v914_v53, 8.507059e+37  ;;  %vm973_vm8 = vweird.f32 %v2172_v31 }
 0x4d9   :  { %v969_v54 = vsub.f32 1.0, %v968_v37  ;;  %vm974_vm10 = vmor %vm972_vm9, %vm973_vm8 }
 0x4db   :  { %v2174_v32 = vpop.eup %2173  ;;  %v970_v2 = vmul.f32 %v2172_v31, %v969_v54 }
 0x4dc   :  { %v2176_v34 = vpop.eup %2175  ;;  %v866_v35 = vmul.f32 %v2174_v32, %v864_v28  ;;  %vm871_vm14 = vweird.f32 %v2174_v32 }
 0x4dd   :  { %v906_v36 = vmul.f32 %v2176_v34, %v904_v29  ;;  %vm911_vm15 = vweird.f32 %v2176_v34  ;;  %vm872_vm3 = vmor %vm870_vm2, %vm871_vm14  ;;  %v2178_v61 = vpop.eup %2177  ;;  %v971_v9 = vadd.f32 %v2172_v31, %v970_v2 }
 0x4de   :  { %v867_v38 = vsub.f32 1.0, %v866_v35  ;;  %vm912_vm6 = vmor %vm910_vm4, %vm911_vm15 }
 0x4df   :  { %v907_v40 = vsub.f32 1.0, %v906_v36  ;;  %v975_v59 = vsel %vm974_vm10, %v2172_v31, %v971_v9 }
 0x4e0   :  { %v868_v41 = vmul.f32 %v2174_v32, %v867_v38  ;;  %v980_v14 = vsel %vm977_vm11, %v979_v12, %v975_v59 }
 0x4e1   :  { %v908_v52 = vmul.f32 %v2176_v34, %v907_v40 }
 0x4e2   :  { %v869_v55 = vadd.f32 %v2174_v32, %v868_v41 }
 0x4e3   :  { %v909_v57 = vadd.f32 %v2176_v34, %v908_v52 }
 0x4e4   :  { %v873_v58 = vsel %vm872_vm3, %v2174_v32, %v869_v55 }
 0x4e5   :  { %v878_v62 = vsel %vm875_vm5, %v877_v56, %v873_v58  ;;  %v913_v0 = vsel %vm912_vm6, %v2176_v34, %v909_v57 }
 0x4e6   :  { %v983_v3 = vmul.f32 %v2178_v61, %v878_v62  ;;  %v918_v4 = vsel %vm915_vm7, %v917_v60, %v913_v0 }
 0x4e7   :  { %v982_v7 = vmul.f32 %v918_v4, %v2861_v1  ;;  %v2053_v1 = vld [vmem:[%s3128_s6 + $0x4] sm:$0x3] }
 0x4e9   :  { %v2885_v8 = vadd.f32 %v983_v3, %v982_v7 }
 0x4eb   :  { %2179 = vtanh.f32 %v2885_v8 }
 0x4f1   :  { %v2180_v13 = vpop.eup %2179 }
 0x4f2   :  { %v986_v15 = vmul.f32 %v2180_v13, %v980_v14 }
 0x4f4   :  { %2181 = vtanh.f32 %v986_v15  ;;  %2054 = vmatmul.msk.f32.vlgmr.msrb.gmra.mxu3 %vm217_vm0, %v986_v15  ;;  %2056 = vmatmul.msk.f32.vlgmr.msrb.gmra.mxu2 %vm217_vm0, %v986_v15 }
 0x4f5   :  { %2058 = vmatmul.msk.f32.vlgmr.msra.gmra.mxu0 %vm217_vm0, %v986_v15  ;;  %2059 = vmatmul.msk.f32.vlgmr.msra.gmra.mxu1 %vm217_vm0, %v986_v15 }
 0x4f6   :  { %1322 = vmatpush.msrb.mxu3 %v2769_v44  ;;  %1362 = vmatpush.msrb.mxu2 %v2771_v45 }
 0x4f7   :  { %1402 = vmatpush.msra.mxu0 %v2779_v48  ;;  %1424 = vmatpush.msra.mxu1 %v2781_v49 }
 0x4f8   :  { %1323 = vmatpush.msrb.mxu3 %v2773_v46  ;;  %1363 = vmatpush.msrb.mxu2 %v2777_v47 }
 0x4f9   :  { %1403 = vmatpush.msra.mxu0 %v2785_v50  ;;  %1425 = vmatpush.msra.mxu1 %v2787_v51 }
 0x4fa   :  { %v2182_v16 = vpop.eup %2181 }
 0x4fb   :  { %v990_v17 = vmul.f32 %v2182_v16, %v2053_v1 }
 0x4fd   :  { %992 = vst.msk [vmem:[#allocation2 + $0x4] sm:$0x3] %vm679_vm1, %v990_v17 }
 0x572   :  { %v1115_v18 = vpop.f32.mrf.mxu1  ;;  %v1093_v34 = vpop.f32.mrf.mxu0 }
 0x573   :  { %v1118_v19 = vadd.f32 %v1115_v18, %v2816_v63  ;;  %v1096_v37 = vadd.f32 %v1093_v34, %v2834_v22 }
 0x575   :  { %v2060_v20 = vmul.f32 -1.442695, %v1118_v19 }
 0x577   :  { %2183 = vpow2.f32 %v2060_v20  ;;  %v1013_v21 = vpop.f32.mrf.mxu3  ;;  %v1053_v23 = vpop.f32.mrf.mxu2 }
 0x578   :  { %v1016_v24 = vadd.f32 %v1013_v21, %v2825_v5  ;;  %v1056_v25 = vadd.f32 %v1053_v23, %v2827_v6 }
 0x57a   :  { %v2055_v26 = vmul.f32 -1.442695, %v1016_v24  ;;  %v2057_v27 = vmul.f32 -1.442695, %v1056_v25 }
 0x57c   :  { %2185 = vpow2.f32 %v2055_v26 }
 0x57d   :  { %v2184_v28 = vpop.eup %2183  ;;  %2187 = vpow2.f32 %v2057_v27 }
 0x57e   :  { %v1122_v29 = vadd.f32 1.0, %v2184_v28 }
 0x580   :  { %2189 = vrcp.f32 %v1122_v29  ;;  %v1134_v14 = vand.u32 2147483648, %v1122_v29  ;;  %vm1128_vm7 = vweird.f32 %v1122_v29  ;;  %v1132_v15 = vand.u32 2147483647, %v1122_v29 }
 0x582   :  { %v2186_v30 = vpop.eup %2185  ;;  %v1135_v16 = vor.u32 1.1754944e-38, %v1134_v14  ;;  %vm1133_vm9 = vcmp.eq.f32.partialorder %v1132_v15, 8.507059e+37 }
 0x583   :  { %v2188_v31 = vpop.eup %2187  ;;  %v1020_v32 = vadd.f32 1.0, %v2186_v30 }
 0x584   :  { %v1060_v33 = vadd.f32 1.0, %v2188_v31 }
 0x585   :  { %2191 = vrcp.f32 %v1020_v32  ;;  %v1032_v43 = vand.u32 2147483648, %v1020_v32  ;;  %v1030_v54 = vand.u32 2147483647, %v1020_v32  ;;  %vm1026_vm14 = vweird.f32 %v1020_v32 }
 0x586   :  { %2193 = vrcp.f32 %v1060_v33  ;;  %v2190_v35 = vpop.eup %2189  ;;  %v1072_v55 = vand.u32 2147483648, %v1060_v33  ;;  %v1070_v57 = vand.u32 2147483647, %v1060_v33  ;;  %vm1066_vm2 = vweird.f32 %v1060_v33 }
 0x587   :  { %v1124_v41 = vmul.f32 %v2190_v35, %v1122_v29  ;;  %2195 = vtanh.f32 %v1096_v37  ;;  %v1033_v61 = vor.u32 1.1754944e-38, %v1032_v43  ;;  %vm1031_vm3 = vcmp.eq.f32.partialorder %v1030_v54, 8.507059e+37 }
 0x588   :  { %v1073_v2 = vor.u32 1.1754944e-38, %v1072_v55  ;;  %vm1071_vm5 = vcmp.eq.f32.partialorder %v1070_v57, 8.507059e+37  ;;  %vm1129_vm6 = vweird.f32 %v2190_v35 }
 0x589   :  { %v1125_v58 = vsub.f32 1.0, %v1124_v41  ;;  %vm1130_vm8 = vmor %vm1128_vm7, %vm1129_vm6 }
 0x58b   :  { %v2192_v36 = vpop.eup %2191  ;;  %v1126_v9 = vmul.f32 %v2190_v35, %v1125_v58 }
 0x58c   :  { %v2194_v38 = vpop.eup %2193  ;;  %v1022_v39 = vmul.f32 %v2192_v36, %v1020_v32  ;;  %vm1027_vm12 = vweird.f32 %v2192_v36 }
 0x58d   :  { %v1062_v40 = vmul.f32 %v2194_v38, %v1060_v33  ;;  %vm1067_vm13 = vweird.f32 %v2194_v38  ;;  %vm1028_vm15 = vmor %vm1026_vm14, %vm1027_vm12  ;;  %v2196_v3 = vpop.eup %2195  ;;  %v1127_v13 = vadd.f32 %v2190_v35, %v1126_v9 }
 0x58e   :  { %v1023_v42 = vsub.f32 1.0, %v1022_v39  ;;  %vm1068_vm4 = vmor %vm1066_vm2, %vm1067_vm13 }
 0x58f   :  { %v1063_v52 = vsub.f32 1.0, %v1062_v40  ;;  %v1131_v1 = vsel %vm1130_vm8, %v2190_v35, %v1127_v13 }
 0x590   :  { %v1024_v53 = vmul.f32 %v2192_v36, %v1023_v42  ;;  %v1136_v18 = vsel %vm1133_vm9, %v1135_v16, %v1131_v1 }
 0x591   :  { %v1064_v56 = vmul.f32 %v2194_v38, %v1063_v52 }
 0x592   :  { %v1025_v60 = vadd.f32 %v2192_v36, %v1024_v53 }
 0x593   :  { %v1065_v62 = vadd.f32 %v2194_v38, %v1064_v56 }
 0x594   :  { %v1029_v0 = vsel %vm1028_vm15, %v2192_v36, %v1025_v60 }
 0x595   :  { %v1034_v4 = vsel %vm1031_vm3, %v1033_v61, %v1029_v0  ;;  %v1069_v7 = vsel %vm1068_vm4, %v2194_v38, %v1065_v62 }
 0x596   :  { %v1139_v10 = vmul.f32 %v2196_v3, %v1034_v4  ;;  %v1074_v11 = vsel %vm1071_vm5, %v1073_v2, %v1069_v7 }
 0x597   :  { %v1138_v59 = vmul.f32 %v1074_v11, %v2885_v8  ;;  %v2061_v8 = vld [vmem:[%s3128_s6 + $0x6] sm:$0x3] }
 0x599   :  { %v2909_v12 = vadd.f32 %v1139_v10, %v1138_v59 }
 0x59b   :  { %2197 = vtanh.f32 %v2909_v12 }
 0x5a1   :  { %v2198_v17 = vpop.eup %2197 }
 0x5a2   :  { %v1142_v19 = vmul.f32 %v2198_v17, %v1136_v18 }
 0x5a4   :  { %2199 = vtanh.f32 %v1142_v19  ;;  %2062 = vmatmul.msk.f32.vlgmr.msra.gmra.mxu3 %vm217_vm0, %v1142_v19  ;;  %2064 = vmatmul.msk.f32.vlgmr.msra.gmra.mxu2 %vm217_vm0, %v1142_v19 }
 0x5a5   :  { %2066 = vmatmul.msk.f32.vlgmr.msrb.gmra.mxu0 %vm217_vm0, %v1142_v19  ;;  %2067 = vmatmul.msk.f32.vlgmr.msrb.gmra.mxu1 %vm217_vm0, %v1142_v19 }
 0x5a6   :  { %1478 = vmatpush.msra.mxu3 %v2769_v44  ;;  %1518 = vmatpush.msra.mxu2 %v2771_v45 }
 0x5a7   :  { %1558 = vmatpush.msrb.mxu0 %v2779_v48  ;;  %1580 = vmatpush.msrb.mxu1 %v2781_v49 }
 0x5a8   :  { %1479 = vmatpush.msra.mxu3 %v2773_v46  ;;  %1519 = vmatpush.msra.mxu2 %v2777_v47 }
 0x5a9   :  { %1559 = vmatpush.msrb.mxu0 %v2785_v50  ;;  %1581 = vmatpush.msrb.mxu1 %v2787_v51 }
 0x5aa   :  { %v2200_v20 = vpop.eup %2199 }
 0x5ab   :  { %v1146_v21 = vmul.f32 %v2200_v20, %v2061_v8 }
 0x5ad   :  { %1148 = vst.msk [vmem:[#allocation2 + $0x6] sm:$0x3] %vm679_vm1, %v1146_v21 }
 0x622   :  { %v1271_v23 = vpop.f32.mrf.mxu1  ;;  %v1249_v38 = vpop.f32.mrf.mxu0 }
 0x623   :  { %v1274_v24 = vadd.f32 %v1271_v23, %v2816_v63  ;;  %v1252_v41 = vadd.f32 %v1249_v38, %v2834_v22 }
 0x625   :  { %v2068_v25 = vmul.f32 -1.442695, %v1274_v24 }
 0x627   :  { %2201 = vpow2.f32 %v2068_v25  ;;  %v1169_v26 = vpop.f32.mrf.mxu3  ;;  %v1209_v27 = vpop.f32.mrf.mxu2 }
 0x628   :  { %v1172_v28 = vadd.f32 %v1169_v26, %v2825_v5  ;;  %v1212_v29 = vadd.f32 %v1209_v27, %v2827_v6 }
 0x62a   :  { %v2063_v30 = vmul.f32 -1.442695, %v1172_v28  ;;  %v2065_v31 = vmul.f32 -1.442695, %v1212_v29 }
 0x62c   :  { %2203 = vpow2.f32 %v2063_v30 }
 0x62d   :  { %v2202_v32 = vpop.eup %2201  ;;  %2205 = vpow2.f32 %v2065_v31 }
 0x62e   :  { %v1278_v33 = vadd.f32 1.0, %v2202_v32 }
 0x630   :  { %2207 = vrcp.f32 %v1278_v33  ;;  %v1290_v18 = vand.u32 2147483648, %v1278_v33  ;;  %vm1284_vm5 = vweird.f32 %v1278_v33  ;;  %v1288_v19 = vand.u32 2147483647, %v1278_v33 }
 0x632   :  { %v2204_v34 = vpop.eup %2203  ;;  %v1291_v20 = vor.u32 1.1754944e-38, %v1290_v18  ;;  %vm1289_vm7 = vcmp.eq.f32.partialorder %v1288_v19, 8.507059e+37 }
 0x633   :  { %v2206_v35 = vpop.eup %2205  ;;  %v1176_v36 = vadd.f32 1.0, %v2204_v34 }
 0x634   :  { %v1216_v37 = vadd.f32 1.0, %v2206_v35 }
 0x635   :  { %2209 = vrcp.f32 %v1176_v36  ;;  %v1188_v55 = vand.u32 2147483648, %v1176_v36  ;;  %v1186_v58 = vand.u32 2147483647, %v1176_v36  ;;  %vm1182_vm12 = vweird.f32 %v1176_v36 }
 0x636   :  { %2211 = vrcp.f32 %v1216_v37  ;;  %v2208_v39 = vpop.eup %2207  ;;  %v1228_v60 = vand.u32 2147483648, %v1216_v37  ;;  %v1226_v62 = vand.u32 2147483647, %v1216_v37  ;;  %vm1222_vm14 = vweird.f32 %v1216_v37 }
 0x637   :  { %v1280_v53 = vmul.f32 %v2208_v39, %v1278_v33  ;;  %2213 = vtanh.f32 %v1252_v41  ;;  %v1189_v3 = vor.u32 1.1754944e-38, %v1188_v55  ;;  %vm1187_vm15 = vcmp.eq.f32.partialorder %v1186_v58, 8.507059e+37 }
 0x638   :  { %v1229_v9 = vor.u32 1.1754944e-38, %v1228_v60  ;;  %vm1227_vm3 = vcmp.eq.f32.partialorder %v1226_v62, 8.507059e+37  ;;  %vm1285_vm4 = vweird.f32 %v2208_v39 }
 0x639   :  { %v1281_v0 = vsub.f32 1.0, %v1280_v53  ;;  %vm1286_vm6 = vmor %vm1284_vm5, %vm1285_vm4 }
 0x63b   :  { %v2210_v40 = vpop.eup %2209  ;;  %v1282_v13 = vmul.f32 %v2208_v39, %v1281_v0 }
 0x63c   :  { %v2212_v42 = vpop.eup %2211  ;;  %v1178_v43 = vmul.f32 %v2210_v40, %v1176_v36  ;;  %vm1183_vm10 = vweird.f32 %v2210_v40 }
 0x63d   :  { %v1218_v52 = vmul.f32 %v2212_v42, %v1216_v37  ;;  %vm1223_vm11 = vweird.f32 %v2212_v42  ;;  %vm1184_vm13 = vmor %vm1182_vm12, %vm1183_vm10  ;;  %v2214_v10 = vpop.eup %2213  ;;  %v1283_v17 = vadd.f32 %v2208_v39, %v1282_v13 }
 0x63e   :  { %v1179_v54 = vsub.f32 1.0, %v1178_v43  ;;  %vm1224_vm2 = vmor %vm1222_vm14, %vm1223_vm11 }
 0x63f   :  { %v1219_v56 = vsub.f32 1.0, %v1218_v52  ;;  %v1287_v8 = vsel %vm1286_vm6, %v2208_v39, %v1283_v17 }
 0x640   :  { %v1180_v57 = vmul.f32 %v2210_v40, %v1179_v54  ;;  %v1292_v23 = vsel %vm1289_vm7, %v1291_v20, %v1287_v8 }
 0x641   :  { %v1220_v61 = vmul.f32 %v2212_v42, %v1219_v56 }
 0x642   :  { %v1181_v2 = vadd.f32 %v2210_v40, %v1180_v57 }
 0x643   :  { %v1221_v4 = vadd.f32 %v2212_v42, %v1220_v61 }
 0x644   :  { %v1185_v7 = vsel %vm1184_vm13, %v2210_v40, %v1181_v2 }
 0x645   :  { %v1190_v11 = vsel %vm1187_vm15, %v1189_v3, %v1185_v7  ;;  %v1225_v59 = vsel %vm1224_vm2, %v2212_v42, %v1221_v4 }
 0x646   :  { %v1295_v14 = vmul.f32 %v2214_v10, %v1190_v11  ;;  %v1230_v15 = vsel %vm1227_vm3, %v1229_v9, %v1225_v59 }
 0x647   :  { %v1294_v1 = vmul.f32 %v1230_v15, %v2909_v12  ;;  %v2069_v12 = vld [vmem:[%s3128_s6 + $0x8] sm:$0x3] }
 0x649   :  { %v2933_v16 = vadd.f32 %v1295_v14, %v1294_v1 }
 0x64b   :  { %2215 = vtanh.f32 %v2933_v16 }
 0x651   :  { %v2216_v21 = vpop.eup %2215 }
 0x652   :  { %v1298_v24 = vmul.f32 %v2216_v21, %v1292_v23 }
 0x654   :  { %2217 = vtanh.f32 %v1298_v24  ;;  %2070 = vmatmul.msk.f32.vlgmr.msrb.gmra.mxu3 %vm217_vm0, %v1298_v24  ;;  %2072 = vmatmul.msk.f32.vlgmr.msrb.gmra.mxu2 %vm217_vm0, %v1298_v24 }
 0x655   :  { %2074 = vmatmul.msk.f32.vlgmr.msra.gmra.mxu0 %vm217_vm0, %v1298_v24  ;;  %2075 = vmatmul.msk.f32.vlgmr.msra.gmra.mxu1 %vm217_vm0, %v1298_v24 }
 0x656   :  { %1634 = vmatpush.msrb.mxu3 %v2769_v44  ;;  %1674 = vmatpush.msrb.mxu2 %v2771_v45 }
 0x657   :  { %1714 = vmatpush.msra.mxu0 %v2779_v48  ;;  %1736 = vmatpush.msra.mxu1 %v2781_v49 }
 0x658   :  { %1635 = vmatpush.msrb.mxu3 %v2773_v46  ;;  %1675 = vmatpush.msrb.mxu2 %v2777_v47 }
 0x659   :  { %1715 = vmatpush.msra.mxu0 %v2785_v50  ;;  %1737 = vmatpush.msra.mxu1 %v2787_v51 }
 0x65a   :  { %v2218_v25 = vpop.eup %2217 }
 0x65b   :  { %v1302_v44 = vmul.f32 %v2218_v25, %v2069_v12 }
 0x65d   :  { %1304 = vst.msk [vmem:[#allocation2 + $0x8] sm:$0x3] %vm679_vm1, %v1302_v44 }
 0x6d2   :  { %v1427_v45 = vpop.f32.mrf.mxu1  ;;  %v1405_v34 = vpop.f32.mrf.mxu0 }
 0x6d3   :  { %v1430_v48 = vadd.f32 %v1427_v45, %v2816_v63  ;;  %v1408_v37 = vadd.f32 %v1405_v34, %v2834_v22 }
 0x6d5   :  { %v2076_v49 = vmul.f32 -1.442695, %v1430_v48 }
 0x6d7   :  { %2219 = vpow2.f32 %v2076_v49  ;;  %v1325_v26 = vpop.f32.mrf.mxu3  ;;  %v1365_v27 = vpop.f32.mrf.mxu2 }
 0x6d8   :  { %v1328_v28 = vadd.f32 %v1325_v26, %v2825_v5  ;;  %v1368_v46 = vadd.f32 %v1365_v27, %v2827_v6 }
 0x6da   :  { %v2071_v47 = vmul.f32 -1.442695, %v1328_v28  ;;  %v2073_v29 = vmul.f32 -1.442695, %v1368_v46 }
 0x6dc   :  { %2221 = vpow2.f32 %v2071_v47 }
 0x6dd   :  { %v2220_v50 = vpop.eup %2219  ;;  %2223 = vpow2.f32 %v2073_v29 }
 0x6de   :  { %v1434_v51 = vadd.f32 1.0, %v2220_v50 }
 0x6e0   :  { %2225 = vrcp.f32 %v1434_v51  ;;  %v1446_v15 = vand.u32 2147483648, %v1434_v51  ;;  %vm1440_vm3 = vweird.f32 %v1434_v51  ;;  %v1444_v1 = vand.u32 2147483647, %v1434_v51 }
 0x6e2   :  { %v2222_v30 = vpop.eup %2221  ;;  %v1447_v18 = vor.u32 1.1754944e-38, %v1446_v15  ;;  %vm1445_vm5 = vcmp.eq.f32.partialorder %v1444_v1, 8.507059e+37 }
 0x6e3   :  { %v2224_v31 = vpop.eup %2223  ;;  %v1332_v32 = vadd.f32 1.0, %v2222_v30 }
 0x6e4   :  { %v1372_v33 = vadd.f32 1.0, %v2224_v31  ;;  %v2977_v31 = vld [vmem:[%s3109_s17 + $0x8] sm:$0xff] }
 0x6e5   :  { %2227 = vrcp.f32 %v1332_v32  ;;  %v1344_v43 = vand.u32 2147483648, %v1332_v32  ;;  %v1342_v54 = vand.u32 2147483647, %v1332_v32  ;;  %vm1338_vm10 = vweird.f32 %v1332_v32 }
 0x6e6   :  { %2229 = vrcp.f32 %v1372_v33  ;;  %v2226_v35 = vpop.eup %2225  ;;  %v1384_v55 = vand.u32 2147483648, %v1372_v33  ;;  %v1382_v57 = vand.u32 2147483647, %v1372_v33  ;;  %vm1378_vm12 = vweird.f32 %v1372_v33 }
 0x6e7   :  { %v1436_v41 = vmul.f32 %v2226_v35, %v1434_v51  ;;  %2231 = vtanh.f32 %v1408_v37  ;;  %v1345_v61 = vor.u32 1.1754944e-38, %v1344_v43  ;;  %vm1343_vm13 = vcmp.eq.f32.partialorder %v1342_v54, 8.507059e+37 }
 0x6e8   :  { %v1385_v2 = vor.u32 1.1754944e-38, %v1384_v55  ;;  %vm1383_vm15 = vcmp.eq.f32.partialorder %v1382_v57, 8.507059e+37  ;;  %vm1441_vm2 = vweird.f32 %v2226_v35 }
 0x6e9   :  { %v1437_v58 = vsub.f32 1.0, %v1436_v41  ;;  %vm1442_vm4 = vmor %vm1440_vm3, %vm1441_vm2 }
 0x6eb   :  { %v2228_v36 = vpop.eup %2227  ;;  %v1438_v9 = vmul.f32 %v2226_v35, %v1437_v58 }
 0x6ec   :  { %v2230_v38 = vpop.eup %2229  ;;  %v1334_v39 = vmul.f32 %v2228_v36, %v1332_v32  ;;  %vm1339_vm8 = vweird.f32 %v2228_v36 }
 0x6ed   :  { %v1374_v40 = vmul.f32 %v2230_v38, %v1372_v33  ;;  %vm1379_vm9 = vweird.f32 %v2230_v38  ;;  %vm1340_vm11 = vmor %vm1338_vm10, %vm1339_vm8  ;;  %v2232_v3 = vpop.eup %2231  ;;  %v1439_v14 = vadd.f32 %v2226_v35, %v1438_v9 }
 0x6ee   :  { %v1335_v42 = vsub.f32 1.0, %v1334_v39  ;;  %vm1380_vm14 = vmor %vm1378_vm12, %vm1379_vm9 }
 0x6ef   :  { %v1375_v52 = vsub.f32 1.0, %v1374_v40  ;;  %v1443_v17 = vsel %vm1442_vm4, %v2226_v35, %v1439_v14  ;;  %v2987_v35 = vld [vmem:[%s3109_s17] sm:$0xff]  ;;  %vm1971_vm4 = vcmask 9216  }
 0x6f0   :  { %v1336_v53 = vmul.f32 %v2228_v36, %v1335_v42  ;;  %v1448_v8 = vsel %vm1445_vm5, %v1447_v18, %v1443_v17 }
 0x6f1   :  { %v1376_v56 = vmul.f32 %v2230_v38, %v1375_v52 }
 0x6f2   :  { %v1337_v60 = vadd.f32 %v2228_v36, %v1336_v53 }
 0x6f3   :  { %v1377_v62 = vadd.f32 %v2230_v38, %v1376_v56 }
 0x6f4   :  { %v1341_v0 = vsel %vm1340_vm11, %v2228_v36, %v1337_v60 }
 0x6f5   :  { %v1346_v4 = vsel %vm1343_vm13, %v1345_v61, %v1341_v0  ;;  %v1381_v7 = vsel %vm1380_vm14, %v2230_v38, %v1377_v62 }
 0x6f6   :  { %v1451_v10 = vmul.f32 %v2232_v3, %v1346_v4  ;;  %v1386_v11 = vsel %vm1383_vm15, %v1385_v2, %v1381_v7 }
 0x6f7   :  { %v1450_v59 = vmul.f32 %v1386_v11, %v2933_v16  ;;  %v2077_v16 = vld [vmem:[%s3128_s6 + $0xa] sm:$0x3] }
 0x6f9   :  { %v2957_v13 = vadd.f32 %v1451_v10, %v1450_v59 }
 0x6fb   :  { %2233 = vtanh.f32 %v2957_v13 }
 0x701   :  { %v2234_v19 = vpop.eup %2233 }
 0x702   :  { %v1454_v20 = vmul.f32 %v2234_v19, %v1448_v8 }
 0x704   :  { %2235 = vtanh.f32 %v1454_v20  ;;  %2078 = vmatmul.msk.f32.vlgmr.msra.gmra.mxu3 %vm217_vm0, %v1454_v20  ;;  %2080 = vmatmul.msk.f32.vlgmr.msra.gmra.mxu2 %vm217_vm0, %v1454_v20 }
 0x705   :  { %2082 = vmatmul.msk.f32.vlgmr.msrb.gmra.mxu0 %vm217_vm0, %v1454_v20  ;;  %2083 = vmatmul.msk.f32.vlgmr.msrb.gmra.mxu1 %vm217_vm0, %v1454_v20 }
 0x706   :  { %1804 = vmatpush.msra.mxu3 %v2977_v31  ;;  %1827 = vmatpush.msra.mxu2 %v2977_v31 }
 0x707   :  { %1850 = vmatpush.msrb.mxu0 %v2977_v31  ;;  %1873 = vmatpush.msrb.mxu1 %v2977_v31 }
 0x708   :  { %1805 = vmatpush.msra.mxu3 %v2987_v35  ;;  %1828 = vmatpush.msra.mxu2 %v2987_v35 }
 0x709   :  { %1851 = vmatpush.msrb.mxu0 %v2987_v35  ;;  %1874 = vmatpush.msrb.mxu1 %v2987_v35 }
 0x70a   :  { %v2236_v21 = vpop.eup %2235 }
 0x70b   :  { %v1458_v23 = vmul.f32 %v2236_v21, %v2077_v16  ;;  %v1773_v21 = vld [vmem:[#allocation2] sm:$0x3] }
 0x70d   :  { %1460 = vst.msk [vmem:[#allocation2 + $0xa] sm:$0x3] %vm679_vm1, %v1458_v23  ;;  %v1774_v23 = vld [vmem:[#allocation2 + $0x2] sm:$0x3] }
 0x782   :  { %v1583_v24 = vpop.f32.mrf.mxu1  ;;  %v1561_v30 = vpop.f32.mrf.mxu0 }
 0x783   :  { %v1586_v12 = vadd.f32 %v1583_v24, %v2816_v63  ;;  %v1564_v34 = vadd.f32 %v1561_v30, %v2834_v22  ;;  %v1775_v24 = vld [vmem:[#allocation2 + $0x4] sm:$0x3] }
 0x785   :  { %v2084_v25 = vmul.f32 -1.442695, %v1586_v12  ;;  %v1776_v12 = vld [vmem:[#allocation2 + $0x6] sm:$0x3] }
 0x787   :  { %2237 = vpow2.f32 %v2084_v25  ;;  %v1481_v44 = vpop.f32.mrf.mxu3  ;;  %v1521_v45 = vpop.f32.mrf.mxu2  ;;  %v1777_v25 = vld [vmem:[#allocation2 + $0x8] sm:$0x3] }
 0x788   :  { %v1484_v48 = vadd.f32 %v1481_v44, %v2825_v5  ;;  %v1524_v49 = vadd.f32 %v1521_v45, %v2827_v6  ;;  %v1778_v44 = vld [vmem:[#allocation2 + $0xa] sm:$0x3] }
 0x78a   :  { %v2079_v26 = vmul.f32 -1.442695, %v1484_v48  ;;  %v2081_v27 = vmul.f32 -1.442695, %v1524_v49 }
 0x78c   :  { %2239 = vpow2.f32 %v2079_v26 }
 0x78d   :  { %v2238_v28 = vpop.eup %2237  ;;  %2241 = vpow2.f32 %v2081_v27 }
 0x78e   :  { %v2971_v46 = vadd.f32 1.0, %v2238_v28 }
 0x790   :  { %2243 = vrcp.f32 %v2971_v46  ;;  %v1602_v14 = vand.u32 2147483648, %v2971_v46  ;;  %vm1596_vm15 = vweird.f32 %v2971_v46  ;;  %v1600_v15 = vand.u32 2147483647, %v2971_v46 }
 0x792   :  { %v2240_v47 = vpop.eup %2239  ;;  %v1603_v17 = vor.u32 1.1754944e-38, %v1602_v14  ;;  %vm1601_vm3 = vcmp.eq.f32.partialorder %v1600_v15, 8.507059e+37 }
 0x793   :  { %v2242_v29 = vpop.eup %2241  ;;  %v1488_v50 = vadd.f32 1.0, %v2240_v47  ;;  %v3028_v47 = vld [vmem:[%s3110_s18] ss:$0 sm:$0xff] }
 0x794   :  { %v1528_v51 = vadd.f32 1.0, %v2242_v29 }
 0x795   :  { %2245 = vrcp.f32 %v1488_v50  ;;  %v1500_v41 = vand.u32 2147483648, %v1488_v50  ;;  %v1498_v52 = vand.u32 2147483647, %v1488_v50  ;;  %vm1494_vm8 = vweird.f32 %v1488_v50 }
 0x796   :  { %2247 = vrcp.f32 %v1528_v51  ;;  %v2244_v32 = vpop.eup %2243  ;;  %v1540_v53 = vand.u32 2147483648, %v1528_v51  ;;  %v1538_v55 = vand.u32 2147483647, %v1528_v51  ;;  %vm1534_vm10 = vweird.f32 %v1528_v51 }
 0x797   :  { %v1592_v39 = vmul.f32 %v2244_v32, %v2971_v46  ;;  %2249 = vtanh.f32 %v1564_v34  ;;  %v1501_v58 = vor.u32 1.1754944e-38, %v1500_v41  ;;  %vm1499_vm11 = vcmp.eq.f32.partialorder %v1498_v52, 8.507059e+37 }
 0x798   :  { %v1541_v62 = vor.u32 1.1754944e-38, %v1540_v53  ;;  %vm1539_vm13 = vcmp.eq.f32.partialorder %v1538_v55, 8.507059e+37  ;;  %vm1597_vm14 = vweird.f32 %v2244_v32 }
 0x799   :  { %v1593_v56 = vsub.f32 1.0, %v1592_v39  ;;  %vm1598_vm2 = vmor %vm1596_vm15, %vm1597_vm14 }
 0x79b   :  { %v2246_v33 = vpop.eup %2245  ;;  %v1594_v4 = vmul.f32 %v2244_v32, %v1593_v56 }
 0x79c   :  { %v2248_v36 = vpop.eup %2247  ;;  %v1490_v37 = vmul.f32 %v2246_v33, %v1488_v50  ;;  %vm1495_vm6 = vweird.f32 %v2246_v33 }
 0x79d   :  { %v1530_v38 = vmul.f32 %v2248_v36, %v1528_v51  ;;  %vm1535_vm7 = vweird.f32 %v2248_v36  ;;  %vm1496_vm9 = vmor %vm1494_vm8, %vm1495_vm6  ;;  %v2250_v0 = vpop.eup %2249  ;;  %v1595_v59 = vadd.f32 %v2244_v32, %v1594_v4 }
 0x79e   :  { %v1491_v40 = vsub.f32 1.0, %v1490_v37  ;;  %vm1536_vm12 = vmor %vm1534_vm10, %vm1535_vm7 }
 0x79f   :  { %v1531_v42 = vsub.f32 1.0, %v1530_v38  ;;  %v1599_v1 = vsel %vm1598_vm2, %v2244_v32, %v1595_v59 }
 0x7a0   :  { %v1492_v43 = vmul.f32 %v2246_v33, %v1491_v40  ;;  %v1604_v19 = vsel %vm1601_vm3, %v1603_v17, %v1599_v1 }
 0x7a1   :  { %v1532_v54 = vmul.f32 %v2248_v36, %v1531_v42 }
 0x7a2   :  { %v1493_v57 = vadd.f32 %v2246_v33, %v1492_v43 }
 0x7a3   :  { %v1533_v60 = vadd.f32 %v2248_v36, %v1532_v54 }
 0x7a4   :  { %v1497_v61 = vsel %vm1496_vm9, %v2246_v33, %v1493_v57 }
 0x7a5   :  { %v1502_v2 = vsel %vm1499_vm11, %v1501_v58, %v1497_v61  ;;  %v1537_v3 = vsel %vm1536_vm12, %v2248_v36, %v1533_v60 }
 0x7a6   :  { %v1607_v7 = vmul.f32 %v2250_v0, %v1502_v2  ;;  %v1542_v9 = vsel %vm1539_vm13, %v1541_v62, %v1537_v3 }
 0x7a7   :  { %v1606_v10 = vmul.f32 %v1542_v9, %v2957_v13  ;;  %v2085_v13 = vld [vmem:[%s3128_s6 + $0xc] sm:$0x3] }
 0x7a9   :  { %v2995_v11 = vadd.f32 %v1607_v7, %v1606_v10 }
 0x7ab   :  { %2251 = vtanh.f32 %v2995_v11 }
 0x7b1   :  { %v2252_v18 = vpop.eup %2251 }
 0x7b2   :  { %v1610_v8 = vmul.f32 %v2252_v18, %v1604_v19 }
 0x7b4   :  { %2253 = vtanh.f32 %v1610_v8  ;;  %2086 = vmatmul.msk.f32.vlgmr.msrb.gmra.mxu3 %vm217_vm0, %v1610_v8  ;;  %2088 = vmatmul.msk.f32.vlgmr.msrb.gmra.mxu2 %vm217_vm0, %v1610_v8 }
 0x7b5   :  { %2090 = vmatmul.msk.f32.vlgmr.msra.gmra.mxu0 %vm217_vm0, %v1610_v8  ;;  %2091 = vmatmul.msk.f32.vlgmr.msra.gmra.mxu1 %vm217_vm0, %v1610_v8 }
 0x7b6   :  { %1896 = vmatpush.msrb.mxu3 %v2977_v31  ;;  %1919 = vmatpush.msrb.mxu2 %v2977_v31 }
 0x7b7   :  { %1942 = vmatpush.msra.mxu0 %v2977_v31  ;;  %1965 = vmatpush.msra.mxu1 %v2977_v31 }
 0x7b8   :  { %1897 = vmatpush.msrb.mxu3 %v2987_v35  ;;  %1920 = vmatpush.msrb.mxu2 %v2987_v35 }
 0x7b9   :  { %1943 = vmatpush.msra.mxu0 %v2987_v35  ;;  %1966 = vmatpush.msra.mxu1 %v2987_v35 }
 0x7ba   :  { %v2254_v20 = vpop.eup %2253 }
 0x7bb   :  { %v1614_v16 = vmul.f32 %v2254_v20, %v2085_v13 }
 0x7bc   :  { %2094 = vmatmul.msk.f32.vlgmr.msra.gmra.mxu3 %vm217_vm0, %v1773_v21  ;;  %2095 = vmatmul.msk.f32.vlgmr.msra.gmra.mxu2 %vm217_vm0, %v1774_v23 }
 0x7bd   :  { %1616 = vst.msk [vmem:[#allocation2 + $0xc] sm:$0x3] %vm679_vm1, %v1614_v16  ;;  %2096 = vmatmul.msk.f32.vlgmr.msrb.gmra.mxu0 %vm217_vm0, %v1775_v24  ;;  %2097 = vmatmul.msk.f32.vlgmr.msrb.gmra.mxu1 %vm217_vm0, %v1776_v12 }
 0x7c4   :  { %2098 = vmatmul.msk.f32.vlgmr.msrb.gmra.mxu3 %vm217_vm0, %v1777_v25  ;;  %2099 = vmatmul.msk.f32.vlgmr.msrb.gmra.mxu2 %vm217_vm0, %v1778_v44  ;;  %v1779_v45 = vld [vmem:[#allocation2 + $0xc] sm:$0x3] }
 0x7c5   :  { %2100 = vmatmul.msk.f32.vlgmr.msra.gmra.mxu0 %vm217_vm0, %v1779_v45 }
 0x832   :  { %v1717_v48 = vpop.f32.mrf.mxu0  ;;  %v1739_v49 = vpop.f32.mrf.mxu1 }
 0x833   :  { %v1742_v26 = vadd.f32 %v1739_v49, %v2816_v63  ;;  %v1720_v58 = vadd.f32 %v1717_v48, %v2834_v22 }
 0x835   :  { %v2092_v27 = vmul.f32 -1.442695, %v1742_v26 }
 0x837   :  { %2255 = vpow2.f32 %v2092_v27  ;;  %v1637_v28 = vpop.f32.mrf.mxu3  ;;  %v1677_v46 = vpop.f32.mrf.mxu2 }
 0x838   :  { %v1640_v29 = vadd.f32 %v1637_v28, %v2825_v5  ;;  %v1680_v50 = vadd.f32 %v1677_v46, %v2827_v6 }
 0x83a   :  { %v2087_v51 = vmul.f32 -1.442695, %v1640_v29  ;;  %v2089_v30 = vmul.f32 -1.442695, %v1680_v50  ;;  %v1853_v31 = vpop.f32.mrf.mxu0  ;;  %v1876_v32 = vpop.f32.mrf.mxu1 }
 0x83b   :  { %v1854_v63 = vadd.f32 %v3028_v47, %v1853_v31  ;;  %v1877_v33 = vadd.f32 %v3028_v47, %v1876_v32 }
 0x83c   :  { %2257 = vpow2.f32 %v2087_v51 }
 0x83d   :  { %v2256_v34 = vpop.eup %2255  ;;  %2259 = vpow2.f32 %v2089_v30  ;;  %1974 = vst.msk [vmem:[%s3111_s19 + $0x4] sm:$0x3] %vm1971_vm4, %v1854_v63 }
 0x83e   :  { %1975 = vst.msk [vmem:[%s3111_s19 + $0x6] sm:$0x3] %vm1971_vm4, %v1877_v33  ;;  %v3042_v35 = vadd.f32 1.0, %v2256_v34 }
 0x83f   :  { %v1807_v5 = vpop.f32.mrf.mxu3  ;;  %v1830_v6 = vpop.f32.mrf.mxu2 }
 0x840   :  { %v1808_v36 = vadd.f32 %v3028_v47, %v1807_v5  ;;  %v1831_v37 = vadd.f32 %v3028_v47, %v1830_v6  ;;  %2261 = vrcp.f32 %v3042_v35  ;;  %v1758_v44 = vand.u32 2147483648, %v3042_v35 }
 0x841   :  { %vm1752_vm14 = vweird.f32 %v3042_v35  ;;  %v1756_v45 = vand.u32 2147483647, %v3042_v35 }
 0x842   :  { %v2258_v38 = vpop.eup %2257  ;;  %v1945_v39 = vpop.f32.mrf.mxu0  ;;  %1972 = vst.msk [vmem:[%s3111_s19] sm:$0x3] %vm1971_vm4, %v1808_v36  ;;  %v1759_v49 = vor.u32 1.1754944e-38, %v1758_v44 }
 0x843   :  { %v2260_v40 = vpop.eup %2259  ;;  %v1644_v41 = vadd.f32 1.0, %v2258_v38  ;;  %v1946_v42 = vadd.f32 %v3028_v47, %v1945_v39  ;;  %1973 = vst.msk [vmem:[%s3111_s19 + $0x2] sm:$0x3] %vm1971_vm4, %v1831_v37  ;;  %vm1757_vm2 = vcmp.eq.f32.partialorder %v1756_v45, 8.507059e+37 }
 0x844   :  { %v1684_v43 = vadd.f32 1.0, %v2260_v40 }
 0x845   :  { %2263 = vrcp.f32 %v1644_v41  ;;  %1978 = vst.msk [vmem:[%s3111_s19 + $0xc] sm:$0x3] %vm1971_vm4, %v1946_v42  ;;  %v1656_v3 = vand.u32 2147483648, %v1644_v41  ;;  %v1654_v9 = vand.u32 2147483647, %v1644_v41  ;;  %vm1650_vm7 = vweird.f32 %v1644_v41 }
 0x846   :  { %2265 = vrcp.f32 %v1684_v43  ;;  %v2262_v56 = vpop.eup %2261  ;;  %v1696_v10 = vand.u32 2147483648, %v1684_v43  ;;  %v1694_v22 = vand.u32 2147483647, %v1684_v43  ;;  %vm1690_vm9 = vweird.f32 %v1684_v43 }
 0x847   :  { %v1899_v52 = vpop.f32.mrf.mxu3  ;;  %v1922_v53 = vpop.f32.mrf.mxu2  ;;  %v1748_v0 = vmul.f32 %v2262_v56, %v3042_v35  ;;  %2267 = vtanh.f32 %v1720_v58  ;;  %v1657_v1 = vor.u32 1.1754944e-38, %v1656_v3  ;;  %vm1655_vm10 = vcmp.eq.f32.partialorder %v1654_v9, 8.507059e+37 }
 0x848   :  { %v1900_v54 = vadd.f32 %v3028_v47, %v1899_v52  ;;  %v1923_v55 = vadd.f32 %v3028_v47, %v1922_v53  ;;  %v1697_v19 = vor.u32 1.1754944e-38, %v1696_v10  ;;  %vm1695_vm12 = vcmp.eq.f32.partialorder %v1694_v22, 8.507059e+37 }
 0x849   :  { %v1749_v14 = vsub.f32 1.0, %v1748_v0  ;;  %vm1753_vm13 = vweird.f32 %v2262_v56 }
 0x84a   :  { %1976 = vst.msk [vmem:[%s3111_s19 + $0x8] sm:$0x3] %vm1971_vm4, %v1900_v54  ;;  %vm1754_vm15 = vmor %vm1752_vm14, %vm1753_vm13 }
 0x84b   :  { %v2264_v57 = vpop.eup %2263  ;;  %1977 = vst.msk [vmem:[%s3111_s19 + $0xa] sm:$0x3] %vm1971_vm4, %v1923_v55  ;;  %v1750_v16 = vmul.f32 %v2262_v56, %v1749_v14 }
 0x84c   :  { %v2266_v60 = vpop.eup %2265  ;;  %v1646_v61 = vmul.f32 %v2264_v57, %v1644_v41  ;;  %vm1651_vm5 = vweird.f32 %v2264_v57 }
 0x84d   :  { %v1686_v62 = vmul.f32 %v2266_v60, %v1684_v43  ;;  %vm1691_vm6 = vweird.f32 %v2266_v60  ;;  %vm1652_vm8 = vmor %vm1650_vm7, %vm1651_vm5  ;;  %v2268_v8 = vpop.eup %2267  ;;  %v1751_v25 = vadd.f32 %v2262_v56, %v1750_v16 }
 0x84e   :  { %v1647_v2 = vsub.f32 1.0, %v1646_v61  ;;  %vm1692_vm11 = vmor %vm1690_vm9, %vm1691_vm6 }
 0x84f   :  { %v1687_v4 = vsub.f32 1.0, %v1686_v62  ;;  %v1755_v48 = vsel %vm1754_vm15, %v2262_v56, %v1751_v25 }
 0x850   :  { %v1648_v7 = vmul.f32 %v2264_v57, %v1647_v2  ;;  %v1760_v27 = vsel %vm1757_vm2, %v1759_v49, %v1755_v48 }
 0x851   :  { %v1688_v59 = vmul.f32 %v2266_v60, %v1687_v4 }
 0x852   :  { %v1649_v15 = vadd.f32 %v2264_v57, %v1648_v7 }
 0x853   :  { %v1689_v17 = vadd.f32 %v2266_v60, %v1688_v59 }
 0x854   :  { %v1653_v18 = vsel %vm1652_vm8, %v2264_v57, %v1649_v15 }
 0x855   :  { %v1658_v13 = vsel %vm1655_vm10, %v1657_v1, %v1653_v18  ;;  %v1693_v20 = vsel %vm1692_vm11, %v2266_v60, %v1689_v17 }
 0x856   :  { %v1763_v21 = vmul.f32 %v2268_v8, %v1658_v13  ;;  %v1698_v23 = vsel %vm1695_vm12, %v1697_v19, %v1693_v20 }
 0x857   :  { %v1762_v24 = vmul.f32 %v1698_v23, %v2995_v11  ;;  %v2093_v11 = vld [vmem:[%s3128_s6 + $0xe] sm:$0x3] }
 0x859   :  { %v1764_v12 = vadd.f32 %v1763_v21, %v1762_v24 }
 0x85b   :  { %2269 = vtanh.f32 %v1764_v12 }
 0x861   :  { %v2270_v26 = vpop.eup %2269 }
 0x862   :  { %v1766_v28 = vmul.f32 %v2270_v26, %v1760_v27 }
 0x864   :  { %2271 = vtanh.f32 %v1766_v28 }
 0x86a   :  { %v2272_v46 = vpop.eup %2271 }
 0x86b   :  { %v1770_v29 = vmul.f32 %v2272_v46, %v2093_v11 }
 0x86d   :  { %1772 = vst.msk [vmem:[#allocation2 + $0xe] sm:$0x3] %vm679_vm1, %v1770_v29 }
 0x874   :  { %v1780_v50 = vld [vmem:[#allocation2 + $0xe] sm:$0x3] }
 0x875   :  { %2101 = vmatmul.msk.f32.vlgmr.msra.gmra.mxu1 %vm217_vm0, %v1780_v50 }
 0x8f2   :  { %v1968_v51 = vpop.f32.mrf.mxu1 }
 0x8f3   :  { %v1969_v30 = vadd.f32 %v3028_v47, %v1968_v51 }
 0x8f5   :  { %1979 = vst.msk [vmem:[%s3111_s19 + $0xe] sm:$0x3] %vm1971_vm4, %v1969_v30 }
 0x8f6   :  { %2573 = dma.done.wait [#allocation5], 32  }
 0x8f7   :  { %2574 = vsyncadd [#allocation5], 4294967264 }
 0x8f8   :  { %2575 = dma.done.wait [#allocation22], 32  }
 0x8f9   :  { %2576 = vsyncadd [#allocation22], 4294967264 }
 0x8fa   :  { %2014 = vsyncpa [#allocation4], 1 }
 0x8fb   :  { %2015 = vsyncpa [#allocation7], 1 }
 0x8fc   :  { %2016 = vsyncpa [#allocation10], 1 }
 0x8fd   :  { %2017 = vsyncpa [#allocation13], 1 }
 0x8fe   :  { %2018 = vsyncpa [#allocation16], 1 }
 0x8ff   :  { %2019 = vsyncpa [#allocation19], 1 }
 0x900   :  { %2020 = vsyncpa [#allocation5], 1 }
 0x901   :  { %2021 = vsyncpa [#allocation22], 1 }

</bundles_post_ra>
